<compile_context>
chip_gen: v7x
topology: tpu7x:2x2x1
jax: 0.10.0
libtpu: 0.0.40
codegen_flags: <defaults>
</compile_context>

<pallas_src>
import functools

import jax
import jax.numpy as jnp
from jax.experimental import pallas as pl
from jax.experimental.pallas import tpu as pltpu


# -----------------------------------------------------------------------------
# Pallas kernel: single invocation; phase 1 batched over T, phase 2 unrolled.
# -----------------------------------------------------------------------------
def _gnn_lstm_kernel(
    x_ref, a_ref, feat_ref,
    w1_ref, b1_ref, w2r_ref, b2r_ref, mask_ref, pmat_ref, fcw_ref, fcb_ref,
    wx_ref, wg_ref, wh_ref, b4_ref,
    out_ref, cN_ref,
    *, seq_len, hidden, batch):
    f32 = jnp.float32
    T, B, H = seq_len, batch, hidden

    # ---- Phase 1: batched GNN + input-side gate projections (all T at once) ----
    A = a_ref[...]                                                     # (T*N, T*N) block-diag
    # GCNConv 1: relu(A_hat @ (X @ W1) + b1), all steps stacked on rows.
    xw1 = jnp.dot(feat_ref[...], w1_ref[...], preferred_element_type=f32)   # (T*N, GH)
    h1 = jnp.maximum(jnp.dot(A, xw1, preferred_element_type=f32) + b1_ref[...], 0.0)
    # GCNConv 2 against the column-tiled W2 -> lane-dense (T*N, N*GH) result:
    #   h2r[t*N + n, m*GH + k] == h2_t[n, k]
    h2r = jnp.dot(A, jnp.dot(h1, w2r_ref[...], preferred_element_type=f32),
                  preferred_element_type=f32) + b2r_ref[...]           # (T*N, N*GH)
    # Row-major flatten per step: mask-select (column-dependent row pick) then
    # block-row segment sum as one small matmul. h2_flat[t, n*GH+k] == h2_t[n, k].
    h2_flat = jnp.dot(pmat_ref[...], h2r * mask_ref[...],
                      preferred_element_type=f32)                      # (T, N*GH)
    # fc + relu for every step in one 128-wide contraction.
    gnn = jnp.maximum(jnp.dot(h2_flat, fcw_ref[...], preferred_element_type=f32)
                      + fcb_ref[...], 0.0)                             # (T, G)

    # Input-side fused gate pre-activations, hoisted off the serial chain.
    zx = jnp.dot(x_ref[...], wx_ref[...], preferred_element_type=f32)  # (T*B, 4H)
    zgb = jnp.dot(gnn, wg_ref[...], preferred_element_type=f32) + b4_ref[...]  # (T, 4H)

    # ---- Phase 2: LSTM recurrence; only h @ Wh is on the serial chain ----
    wh = wh_ref[...]                                                   # (H, 4H)  [i|f|o|g]
    h = jnp.zeros((B, H), f32)
    c = jnp.zeros((B, H), f32)
    outs = []
    for t in range(T):
        z = (zx[t * B:(t + 1) * B, :] + zgb[t:t + 1, :]
             + jnp.dot(h, wh, preferred_element_type=f32))             # (B, 4H)
        s = jax.nn.sigmoid(z[:, :3 * H])     # one sigmoid over contiguous [i|f|o]
        g_t = jnp.tanh(z[:, 3 * H:])
        i_t = s[:, :H]
        f_t = s[:, H:2 * H]
        o_t = s[:, 2 * H:]
        c = f_t * c + i_t * g_t
        h = o_t * jnp.tanh(c)
        outs.append(h)

    # Single lane-dense output store: slab[b, t*H + k] = h_t[b, k].
    out_ref[...] = jnp.concatenate(outs, axis=1)                       # (B, T*H)
    cN_ref[...] = c


# -----------------------------------------------------------------------------
# Wrapper: pre-arrange operands/weights (plain XLA), single-invocation pallas_call.
# -----------------------------------------------------------------------------
def gnn_lstm_forward(x_seq, a_seq, feat_seq, params):
    T, B, I = x_seq.shape
    _, N, F = feat_seq.shape
    GH = params["w2"].shape[0]
    H = params["whi"].shape[0]

    # Batched phase-1 operands.
    eyeT = jnp.eye(T, dtype=jnp.float32)
    # Block-diagonal adjacency: A_bd[t*N+i, s*N+j] = a_seq[t,i,j] if t==s else 0.
    a_bd = (a_seq[:, :, None, :] * eyeT[:, None, :, None]).reshape(T * N, T * N)
    feat_flat = feat_seq.reshape(T * N, F)
    x_flat = x_seq.reshape(T * B, I)

    # conv2 weight/bias column-tiled so conv2 output is a lane-dense (T*N, N*GH) tile.
    w2r = jnp.tile(params["w2"], (1, N))                               # (GH, N*GH)
    b2r = jnp.tile(params["b2"], (1, N))                               # (1, N*GH)
    # mask[n, m*GH + k] = 1 iff m == n (row-major flatten selector), tiled over T.
    mask = jnp.repeat(jnp.eye(N, dtype=jnp.float32), GH, axis=1)       # (N, N*GH)
    mask_tn = jnp.tile(mask, (T, 1))                                   # (T*N, N*GH)
    # pmat[t, s*N + n] = 1 iff s == t (block-row segment-sum as a matmul).
    pmat = jnp.repeat(jnp.eye(T, dtype=jnp.float32), N, axis=1)        # (T, T*N)

    # Fused LSTM gate weights, gate order [i | f | o | g] along the 4H axis.
    wx = jnp.concatenate([params["wii"], params["wif"], params["wio"], params["wig"]], axis=1)
    wg = jnp.concatenate([params["wgi"], params["wgf"], params["wgo"], params["wgg"]], axis=1)
    wh = jnp.concatenate([params["whi"], params["whf"], params["who"], params["whg"]], axis=1)
    b4 = jnp.concatenate([params["bi"], params["bf"], params["bo"], params["bg"]], axis=1)

    weights = [params["w1"], params["b1"], w2r, b2r, mask_tn, pmat,
               params["fcw_flat"], params["fcb"], wx, wg, wh, b4]

    def full_spec(arr):
        nd = arr.ndim
        return pl.BlockSpec(arr.shape, lambda i, _nd=nd: (0,) * _nd)

    in_specs = ([full_spec(x_flat), full_spec(a_bd), full_spec(feat_flat)]
                + [full_spec(w) for w in weights])

    out_shapes = (
        jax.ShapeDtypeStruct((B, T * H), jnp.float32),   # lane-dense h slab
        jax.ShapeDtypeStruct((B, H), jnp.float32),       # final c
    )
    out_specs = [
        pl.BlockSpec((B, T * H), lambda i: (0, 0)),
        pl.BlockSpec((B, H), lambda i: (0, 0)),
    ]

    kernel = functools.partial(_gnn_lstm_kernel, seq_len=T, hidden=H, batch=B)

    slab, c_T = pl.pallas_call(
        kernel,
        out_shape=out_shapes,
        grid_spec=pltpu.PrefetchScalarGridSpec(
            num_scalar_prefetch=0,
            grid=(1,),
            in_specs=in_specs,
            out_specs=out_specs,
        ),
        compiler_params=pltpu.CompilerParams(
            dimension_semantics=("arbitrary",)),
    )(x_flat, a_bd, feat_flat, *weights)

    # Un-slab with plain XLA: (B, T*H) -> (T, B, H); h_T is the last step.
    outputs = slab.reshape(B, T, H).transpose(1, 0, 2)
    h_T = outputs[-1]
    return outputs, h_T, c_T


# -----------------------------------------------------------------------------
# Pure-JAX reference (mirrors the PyTorch forward) for a correctness check
# -----------------------------------------------------------------------------
def reference_forward(x_seq, a_seq, feat_seq, p):
    T, B, _ = x_seq.shape
    H = p["whi"].shape[0]
    h = jnp.zeros((B, H), jnp.float32)
    c = jnp.zeros((B, H), jnp.float32)
    outs = []
    for t in range(T):
        A, X, x_t = a_seq[t], feat_seq[t], x_seq[t]
        h1 = jnp.maximum(A @ (X @ p["w1"]) + p["b1"], 0.0)
        h2 = A @ (h1 @ p["w2"]) + p["b2"]
        gnn = jnp.maximum(h2.reshape(1, -1) @ p["fcw_flat"] + p["fcb"], 0.0)

        def gate(wi, wg, wh, b):
            return x_t @ wi + gnn @ wg + h @ wh + b

        i_t = jax.nn.sigmoid(gate(p["wii"], p["wgi"], p["whi"], p["bi"]))
        f_t = jax.nn.sigmoid(gate(p["wif"], p["wgf"], p["whf"], p["bf"]))
        g_t = jnp.tanh(gate(p["wig"], p["wgg"], p["whg"], p["bg"]))
        o_t = jax.nn.sigmoid(gate(p["wio"], p["wgo"], p["who"], p["bo"]))
        c = f_t * c + i_t * g_t
        h = o_t * jnp.tanh(c)
        outs.append(h)
    return jnp.stack(outs, axis=0), h, c


# -----------------------------------------------------------------------------
# Glue: deterministic params, synthetic graph data, normalized adjacency
# -----------------------------------------------------------------------------
def normalized_adjacency(edge_index, n):
    # GCNConv-style: A_hat = D^-1/2 (A + I) D^-1/2 (undirected, self-loops)
    A = jnp.zeros((n, n), jnp.float32)
    A = A.at[edge_index[0], edge_index[1]].set(1.0)
    A = jnp.maximum(A, A.T)
    A = A + jnp.eye(n, dtype=jnp.float32)
    dinv = 1.0 / jnp.sqrt(A.sum(axis=1))
    return A * dinv[:, None] * dinv[None, :]


if __name__ == "__main__":
    # Small shapes consistent with the module's forward:
    x_shape = 8            # number of nodes == node feature dim (required by fc)
    gnn_hidden = 16
    covariate_size = 4
    target_width = 4       # G = tw*(tw-1) = 12
    hidden_size = 32       # 4H = 128 (one full lane width for the fused gates)
    seq_len = 8
    batch = 2

    G = target_width * (target_width - 1)
    input_size = covariate_size + G
    N = F = x_shape
    stdv = 1.0 / hidden_size ** 0.5

    key = jax.random.PRNGKey(0)

    def uni(key, shape):
        return jax.random.uniform(key, shape, jnp.float32, -stdv, stdv)

    names_shapes = [
        ("w1", (F, gnn_hidden)), ("b1", (1, gnn_hidden)),
        ("w2", (gnn_hidden, gnn_hidden)), ("b2", (1, gnn_hidden)),
        ("fcw_flat", (N * gnn_hidden, G)), ("fcb", (1, G)),
        ("wii", (input_size, hidden_size)), ("wgi", (G, hidden_size)),
        ("whi", (hidden_size, hidden_size)), ("bi", (1, hidden_size)),
        ("wif", (input_size, hidden_size)), ("wgf", (G, hidden_size)),
        ("whf", (hidden_size, hidden_size)), ("bf", (1, hidden_size)),
        ("wig", (input_size, hidden_size)), ("wgg", (G, hidden_size)),
        ("whg", (hidden_size, hidden_size)), ("bg", (1, hidden_size)),
        ("wio", (input_size, hidden_size)), ("wgo", (G, hidden_size)),
        ("who", (hidden_size, hidden_size)), ("bo", (1, hidden_size)),
    ]
    keys = jax.random.split(key, len(names_shapes) + 3)
    params = {name: uni(k, shp) for (name, shp), k in zip(names_shapes, keys)}

    # Synthetic per-timestep graph data (stands in for GNN_dataset[t])
    k_x, k_feat, k_edge = keys[-3], keys[-2], keys[-1]
    x_seq = jax.random.normal(k_x, (seq_len, batch, input_size), jnp.float32)
    feat_seq = jax.random.normal(k_feat, (seq_len, N, F), jnp.float32)

    n_edges = 16
    a_list = []
    for t in range(seq_len):
        ek = jax.random.fold_in(k_edge, t)
        edge_index = jax.random.randint(ek, (2, n_edges), 0, N)
        a_list.append(normalized_adjacency(edge_index, N))
    a_seq = jnp.stack(a_list, axis=0)

    outputs, h_T, c_T = gnn_lstm_forward(x_seq, a_seq, feat_seq, params)
    jax.block_until_ready((outputs, h_T, c_T))

    ref_out, ref_h, ref_c = reference_forward(x_seq, a_seq, feat_seq, params)
    assert jnp.allclose(outputs, ref_out, atol=1e-5, rtol=1e-4)
    assert jnp.allclose(h_T, ref_h, atol=1e-5, rtol=1e-4)
    assert jnp.allclose(c_T, ref_c, atol=1e-5, rtol=1e-4)

    print("KERNEL_OK")
</pallas_src>

<mosaic_0001>
module attributes {stable_mosaic.version = 11 : i64} {
  func.func @_gnn_lstm_kernel(%arg0: i32, %arg1: memref<16x16xf32, #tpu.memory_space<vmem>>, %arg2: memref<64x64xf32, #tpu.memory_space<vmem>>, %arg3: memref<64x8xf32, #tpu.memory_space<vmem>>, %arg4: memref<8x16xf32, #tpu.memory_space<vmem>>, %arg5: memref<1x16xf32, #tpu.memory_space<vmem>>, %arg6: memref<16x128xf32, #tpu.memory_space<vmem>>, %arg7: memref<1x128xf32, #tpu.memory_space<vmem>>, %arg8: memref<64x128xf32, #tpu.memory_space<vmem>>, %arg9: memref<8x64xf32, #tpu.memory_space<vmem>>, %arg10: memref<128x12xf32, #tpu.memory_space<vmem>>, %arg11: memref<1x12xf32, #tpu.memory_space<vmem>>, %arg12: memref<16x128xf32, #tpu.memory_space<vmem>>, %arg13: memref<12x128xf32, #tpu.memory_space<vmem>>, %arg14: memref<32x128xf32, #tpu.memory_space<vmem>>, %arg15: memref<1x128xf32, #tpu.memory_space<vmem>>, %arg16: memref<2x256xf32, #tpu.memory_space<vmem>>, %arg17: memref<2x32xf32, #tpu.memory_space<vmem>>) attributes {dimension_semantics = [#tpu.dimension_semantics<arbitrary>], iteration_bounds = array<i64: 1>, scalar_prefetch = 0 : i64, scratch_operands = 0 : i64, tpu.core_type = #tpu.core_type<tc>, window_params = [{pipeline_mode = #tpu.pipeline_mode<synchronous>, transform_indices = @transform_0, window_bounds = array<i64: 16, 16>}, {pipeline_mode = #tpu.pipeline_mode<synchronous>, transform_indices = @transform_1, window_bounds = array<i64: 64, 64>}, {pipeline_mode = #tpu.pipeline_mode<synchronous>, transform_indices = @transform_2, window_bounds = array<i64: 64, 8>}, {pipeline_mode = #tpu.pipeline_mode<synchronous>, transform_indices = @transform_3, window_bounds = array<i64: 8, 16>}, {pipeline_mode = #tpu.pipeline_mode<synchronous>, transform_indices = @transform_4, window_bounds = array<i64: 1, 16>}, {pipeline_mode = #tpu.pipeline_mode<synchronous>, transform_indices = @transform_5, window_bounds = array<i64: 16, 128>}, {pipeline_mode = #tpu.pipeline_mode<synchronous>, transform_indices = @transform_6, window_bounds = array<i64: 1, 128>}, {pipeline_mode = #tpu.pipeline_mode<synchronous>, transform_indices = @transform_7, window_bounds = array<i64: 64, 128>}, {pipeline_mode = #tpu.pipeline_mode<synchronous>, transform_indices = @transform_8, window_bounds = array<i64: 8, 64>}, {pipeline_mode = #tpu.pipeline_mode<synchronous>, transform_indices = @transform_9, window_bounds = array<i64: 128, 12>}, {pipeline_mode = #tpu.pipeline_mode<synchronous>, transform_indices = @transform_10, window_bounds = array<i64: 1, 12>}, {pipeline_mode = #tpu.pipeline_mode<synchronous>, transform_indices = @transform_11, window_bounds = array<i64: 16, 128>}, {pipeline_mode = #tpu.pipeline_mode<synchronous>, transform_indices = @transform_12, window_bounds = array<i64: 12, 128>}, {pipeline_mode = #tpu.pipeline_mode<synchronous>, transform_indices = @transform_13, window_bounds = array<i64: 32, 128>}, {pipeline_mode = #tpu.pipeline_mode<synchronous>, transform_indices = @transform_14, window_bounds = array<i64: 1, 128>}, {pipeline_mode = #tpu.pipeline_mode<synchronous>, transform_indices = @transform_15, window_bounds = array<i64: 2, 256>}, {pipeline_mode = #tpu.pipeline_mode<synchronous>, transform_indices = @transform_16, window_bounds = array<i64: 2, 32>}]} {
    %c0 = arith.constant 0 : index
    %c0_0 = arith.constant 0 : index
    %0 = vector.load %arg2[%c0, %c0_0] : memref<64x64xf32, #tpu.memory_space<vmem>>, vector<64x64xf32>
    %c0_1 = arith.constant 0 : index
    %c0_2 = arith.constant 0 : index
    %1 = vector.load %arg3[%c0_1, %c0_2] : memref<64x8xf32, #tpu.memory_space<vmem>>, vector<64x8xf32>
    %c0_3 = arith.constant 0 : index
    %c0_4 = arith.constant 0 : index
    %2 = vector.load %arg4[%c0_3, %c0_4] : memref<8x16xf32, #tpu.memory_space<vmem>>, vector<8x16xf32>
    %cst = arith.constant dense<0.000000e+00> : vector<64x16xf32>
    %3 = tpu.matmul %1, %2, %cst {dimension_numbers = #tpu.dot_dimension_numbers<[1], [0], [0], [1], [0, 0, 1, 1], [], []>} : vector<64x8xf32>, vector<8x16xf32>, vector<64x16xf32> -> vector<64x16xf32>
    %cst_5 = arith.constant dense<0.000000e+00> : vector<64x16xf32>
    %4 = tpu.matmul %0, %3, %cst_5 {dimension_numbers = #tpu.dot_dimension_numbers<[1], [0], [0], [1], [0, 0, 1, 1], [], []>} : vector<64x64xf32>, vector<64x16xf32>, vector<64x16xf32> -> vector<64x16xf32>
    %c0_6 = arith.constant 0 : index
    %c0_7 = arith.constant 0 : index
    %5 = vector.load %arg5[%c0_6, %c0_7] : memref<1x16xf32, #tpu.memory_space<vmem>>, vector<1x16xf32>
    %6 = vector.broadcast %5 : vector<1x16xf32> to vector<64x16xf32>
    %7 = arith.addf %4, %6 : vector<64x16xf32>
    %cst_8 = arith.constant 0.000000e+00 : f32
    %8 = vector.broadcast %cst_8 : f32 to vector<64x16xf32>
    %9 = arith.maximumf %7, %8 : vector<64x16xf32>
    %c0_9 = arith.constant 0 : index
    %c0_10 = arith.constant 0 : index
    %10 = vector.load %arg6[%c0_9, %c0_10] : memref<16x128xf32, #tpu.memory_space<vmem>>, vector<16x128xf32>
    %cst_11 = arith.constant dense<0.000000e+00> : vector<64x128xf32>
    %11 = tpu.matmul %9, %10, %cst_11 {dimension_numbers = #tpu.dot_dimension_numbers<[1], [0], [0], [1], [0, 0, 1, 1], [], []>} : vector<64x16xf32>, vector<16x128xf32>, vector<64x128xf32> -> vector<64x128xf32>
    %cst_12 = arith.constant dense<0.000000e+00> : vector<64x128xf32>
    %12 = tpu.matmul %0, %11, %cst_12 {dimension_numbers = #tpu.dot_dimension_numbers<[1], [0], [0], [1], [0, 0, 1, 1], [], []>} : vector<64x64xf32>, vector<64x128xf32>, vector<64x128xf32> -> vector<64x128xf32>
    %c0_13 = arith.constant 0 : index
    %c0_14 = arith.constant 0 : index
    %13 = vector.load %arg7[%c0_13, %c0_14] : memref<1x128xf32, #tpu.memory_space<vmem>>, vector<1x128xf32>
    %14 = vector.broadcast %13 : vector<1x128xf32> to vector<64x128xf32>
    %15 = arith.addf %12, %14 : vector<64x128xf32>
    %c0_15 = arith.constant 0 : index
    %c0_16 = arith.constant 0 : index
    %16 = vector.load %arg9[%c0_15, %c0_16] : memref<8x64xf32, #tpu.memory_space<vmem>>, vector<8x64xf32>
    %c0_17 = arith.constant 0 : index
    %c0_18 = arith.constant 0 : index
    %17 = vector.load %arg8[%c0_17, %c0_18] : memref<64x128xf32, #tpu.memory_space<vmem>>, vector<64x128xf32>
    %18 = arith.mulf %15, %17 : vector<64x128xf32>
    %cst_19 = arith.constant dense<0.000000e+00> : vector<8x128xf32>
    %19 = tpu.matmul %16, %18, %cst_19 {dimension_numbers = #tpu.dot_dimension_numbers<[1], [0], [0], [1], [0, 0, 1, 1], [], []>} : vector<8x64xf32>, vector<64x128xf32>, vector<8x128xf32> -> vector<8x128xf32>
    %c0_20 = arith.constant 0 : index
    %c0_21 = arith.constant 0 : index
    %20 = vector.load %arg10[%c0_20, %c0_21] : memref<128x12xf32, #tpu.memory_space<vmem>>, vector<128x12xf32>
    %cst_22 = arith.constant dense<0.000000e+00> : vector<8x12xf32>
    %21 = tpu.matmul %19, %20, %cst_22 {dimension_numbers = #tpu.dot_dimension_numbers<[1], [0], [0], [1], [0, 0, 1, 1], [], []>} : vector<8x128xf32>, vector<128x12xf32>, vector<8x12xf32> -> vector<8x12xf32>
    %c0_23 = arith.constant 0 : index
    %c0_24 = arith.constant 0 : index
    %22 = vector.load %arg11[%c0_23, %c0_24] : memref<1x12xf32, #tpu.memory_space<vmem>>, vector<1x12xf32>
    %23 = vector.broadcast %22 : vector<1x12xf32> to vector<8x12xf32>
    %24 = arith.addf %21, %23 : vector<8x12xf32>
    %cst_25 = arith.constant 0.000000e+00 : f32
    %25 = vector.broadcast %cst_25 : f32 to vector<8x12xf32>
    %26 = arith.maximumf %24, %25 : vector<8x12xf32>
    %c0_26 = arith.constant 0 : index
    %c0_27 = arith.constant 0 : index
    %27 = vector.load %arg1[%c0_26, %c0_27] : memref<16x16xf32, #tpu.memory_space<vmem>>, vector<16x16xf32>
    %c0_28 = arith.constant 0 : index
    %c0_29 = arith.constant 0 : index
    %28 = vector.load %arg12[%c0_28, %c0_29] : memref<16x128xf32, #tpu.memory_space<vmem>>, vector<16x128xf32>
    %cst_30 = arith.constant dense<0.000000e+00> : vector<16x128xf32>
    %29 = tpu.matmul %27, %28, %cst_30 {dimension_numbers = #tpu.dot_dimension_numbers<[1], [0], [0], [1], [0, 0, 1, 1], [], []>} : vector<16x16xf32>, vector<16x128xf32>, vector<16x128xf32> -> vector<16x128xf32>
    %c0_31 = arith.constant 0 : index
    %c0_32 = arith.constant 0 : index
    %30 = vector.load %arg13[%c0_31, %c0_32] : memref<12x128xf32, #tpu.memory_space<vmem>>, vector<12x128xf32>
    %cst_33 = arith.constant dense<0.000000e+00> : vector<8x128xf32>
    %31 = tpu.matmul %26, %30, %cst_33 {dimension_numbers = #tpu.dot_dimension_numbers<[1], [0], [0], [1], [0, 0, 1, 1], [], []>} : vector<8x12xf32>, vector<12x128xf32>, vector<8x128xf32> -> vector<8x128xf32>
    %c0_34 = arith.constant 0 : index
    %c0_35 = arith.constant 0 : index
    %32 = vector.load %arg15[%c0_34, %c0_35] : memref<1x128xf32, #tpu.memory_space<vmem>>, vector<1x128xf32>
    %33 = vector.broadcast %32 : vector<1x128xf32> to vector<8x128xf32>
    %34 = arith.addf %31, %33 : vector<8x128xf32>
    %c0_36 = arith.constant 0 : index
    %c0_37 = arith.constant 0 : index
    %35 = vector.load %arg14[%c0_36, %c0_37] : memref<32x128xf32, #tpu.memory_space<vmem>>, vector<32x128xf32>
    %cst_38 = arith.constant 0.000000e+00 : f32
    %36 = vector.broadcast %cst_38 : f32 to vector<2x32xf32>
    %cst_39 = arith.constant 0.000000e+00 : f32
    %37 = vector.broadcast %cst_39 : f32 to vector<2x32xf32>
    %38 = vector.extract_strided_slice %29 {offsets = [0, 0], sizes = [2, 128], strides = [1, 1]} : vector<16x128xf32> to vector<2x128xf32>
    %39 = vector.extract_strided_slice %34 {offsets = [0, 0], sizes = [1, 128], strides = [1, 1]} : vector<8x128xf32> to vector<1x128xf32>
    %40 = vector.broadcast %39 : vector<1x128xf32> to vector<2x128xf32>
    %41 = arith.addf %38, %40 : vector<2x128xf32>
    %cst_40 = arith.constant dense<0.000000e+00> : vector<2x128xf32>
    %42 = tpu.matmul %36, %35, %cst_40 {dimension_numbers = #tpu.dot_dimension_numbers<[1], [0], [0], [1], [0, 0, 1, 1], [], []>} : vector<2x32xf32>, vector<32x128xf32>, vector<2x128xf32> -> vector<2x128xf32>
    %43 = arith.addf %41, %42 : vector<2x128xf32>
    %44 = vector.extract_strided_slice %43 {offsets = [0, 0], sizes = [2, 96], strides = [1, 1]} : vector<2x128xf32> to vector<2x96xf32>
    %45 = arith.negf %44 : vector<2x96xf32>
    %46 = math.exp %45 : vector<2x96xf32>
    %cst_41 = arith.constant 1.000000e+00 : f32
    %47 = vector.broadcast %cst_41 : f32 to vector<2x96xf32>
    %48 = arith.addf %47, %46 : vector<2x96xf32>
    %49 = arith.divf %47, %48 : vector<2x96xf32>
    %50 = vector.extract_strided_slice %43 {offsets = [0, 96], sizes = [2, 32], strides = [1, 1]} : vector<2x128xf32> to vector<2x32xf32>
    %51 = math.tanh %50 : vector<2x32xf32>
    %52 = vector.extract_strided_slice %49 {offsets = [0, 0], sizes = [2, 32], strides = [1, 1]} : vector<2x96xf32> to vector<2x32xf32>
    %53 = vector.extract_strided_slice %49 {offsets = [0, 32], sizes = [2, 32], strides = [1, 1]} : vector<2x96xf32> to vector<2x32xf32>
    %54 = vector.extract_strided_slice %49 {offsets = [0, 64], sizes = [2, 32], strides = [1, 1]} : vector<2x96xf32> to vector<2x32xf32>
    %55 = arith.mulf %53, %37 : vector<2x32xf32>
    %56 = arith.mulf %52, %51 : vector<2x32xf32>
    %57 = arith.addf %55, %56 : vector<2x32xf32>
    %58 = math.tanh %57 : vector<2x32xf32>
    %59 = arith.mulf %54, %58 : vector<2x32xf32>
    %60 = vector.extract_strided_slice %29 {offsets = [2, 0], sizes = [2, 128], strides = [1, 1]} : vector<16x128xf32> to vector<2x128xf32>
    %61 = vector.extract_strided_slice %34 {offsets = [1, 0], sizes = [1, 128], strides = [1, 1]} : vector<8x128xf32> to vector<1x128xf32>
    %62 = vector.broadcast %61 : vector<1x128xf32> to vector<2x128xf32>
    %63 = arith.addf %60, %62 : vector<2x128xf32>
    %cst_42 = arith.constant dense<0.000000e+00> : vector<2x128xf32>
    %64 = tpu.matmul %59, %35, %cst_42 {dimension_numbers = #tpu.dot_dimension_numbers<[1], [0], [0], [1], [0, 0, 1, 1], [], []>} : vector<2x32xf32>, vector<32x128xf32>, vector<2x128xf32> -> vector<2x128xf32>
    %65 = arith.addf %63, %64 : vector<2x128xf32>
    %66 = vector.extract_strided_slice %65 {offsets = [0, 0], sizes = [2, 96], strides = [1, 1]} : vector<2x128xf32> to vector<2x96xf32>
    %67 = arith.negf %66 : vector<2x96xf32>
    %68 = math.exp %67 : vector<2x96xf32>
    %cst_43 = arith.constant 1.000000e+00 : f32
    %69 = vector.broadcast %cst_43 : f32 to vector<2x96xf32>
    %70 = arith.addf %69, %68 : vector<2x96xf32>
    %71 = arith.divf %69, %70 : vector<2x96xf32>
    %72 = vector.extract_strided_slice %65 {offsets = [0, 96], sizes = [2, 32], strides = [1, 1]} : vector<2x128xf32> to vector<2x32xf32>
    %73 = math.tanh %72 : vector<2x32xf32>
    %74 = vector.extract_strided_slice %71 {offsets = [0, 0], sizes = [2, 32], strides = [1, 1]} : vector<2x96xf32> to vector<2x32xf32>
    %75 = vector.extract_strided_slice %71 {offsets = [0, 32], sizes = [2, 32], strides = [1, 1]} : vector<2x96xf32> to vector<2x32xf32>
    %76 = vector.extract_strided_slice %71 {offsets = [0, 64], sizes = [2, 32], strides = [1, 1]} : vector<2x96xf32> to vector<2x32xf32>
    %77 = arith.mulf %75, %57 : vector<2x32xf32>
    %78 = arith.mulf %74, %73 : vector<2x32xf32>
    %79 = arith.addf %77, %78 : vector<2x32xf32>
    %80 = math.tanh %79 : vector<2x32xf32>
    %81 = arith.mulf %76, %80 : vector<2x32xf32>
    %82 = vector.extract_strided_slice %29 {offsets = [4, 0], sizes = [2, 128], strides = [1, 1]} : vector<16x128xf32> to vector<2x128xf32>
    %83 = vector.extract_strided_slice %34 {offsets = [2, 0], sizes = [1, 128], strides = [1, 1]} : vector<8x128xf32> to vector<1x128xf32>
    %84 = vector.broadcast %83 : vector<1x128xf32> to vector<2x128xf32>
    %85 = arith.addf %82, %84 : vector<2x128xf32>
    %cst_44 = arith.constant dense<0.000000e+00> : vector<2x128xf32>
    %86 = tpu.matmul %81, %35, %cst_44 {dimension_numbers = #tpu.dot_dimension_numbers<[1], [0], [0], [1], [0, 0, 1, 1], [], []>} : vector<2x32xf32>, vector<32x128xf32>, vector<2x128xf32> -> vector<2x128xf32>
    %87 = arith.addf %85, %86 : vector<2x128xf32>
    %88 = vector.extract_strided_slice %87 {offsets = [0, 0], sizes = [2, 96], strides = [1, 1]} : vector<2x128xf32> to vector<2x96xf32>
    %89 = arith.negf %88 : vector<2x96xf32>
    %90 = math.exp %89 : vector<2x96xf32>
    %cst_45 = arith.constant 1.000000e+00 : f32
    %91 = vector.broadcast %cst_45 : f32 to vector<2x96xf32>
    %92 = arith.addf %91, %90 : vector<2x96xf32>
    %93 = arith.divf %91, %92 : vector<2x96xf32>
    %94 = vector.extract_strided_slice %87 {offsets = [0, 96], sizes = [2, 32], strides = [1, 1]} : vector<2x128xf32> to vector<2x32xf32>
    %95 = math.tanh %94 : vector<2x32xf32>
    %96 = vector.extract_strided_slice %93 {offsets = [0, 0], sizes = [2, 32], strides = [1, 1]} : vector<2x96xf32> to vector<2x32xf32>
    %97 = vector.extract_strided_slice %93 {offsets = [0, 32], sizes = [2, 32], strides = [1, 1]} : vector<2x96xf32> to vector<2x32xf32>
    %98 = vector.extract_strided_slice %93 {offsets = [0, 64], sizes = [2, 32], strides = [1, 1]} : vector<2x96xf32> to vector<2x32xf32>
    %99 = arith.mulf %97, %79 : vector<2x32xf32>
    %100 = arith.mulf %96, %95 : vector<2x32xf32>
    %101 = arith.addf %99, %100 : vector<2x32xf32>
    %102 = math.tanh %101 : vector<2x32xf32>
    %103 = arith.mulf %98, %102 : vector<2x32xf32>
    %104 = vector.extract_strided_slice %29 {offsets = [6, 0], sizes = [2, 128], strides = [1, 1]} : vector<16x128xf32> to vector<2x128xf32>
    %105 = vector.extract_strided_slice %34 {offsets = [3, 0], sizes = [1, 128], strides = [1, 1]} : vector<8x128xf32> to vector<1x128xf32>
    %106 = vector.broadcast %105 : vector<1x128xf32> to vector<2x128xf32>
    %107 = arith.addf %104, %106 : vector<2x128xf32>
    %cst_46 = arith.constant dense<0.000000e+00> : vector<2x128xf32>
    %108 = tpu.matmul %103, %35, %cst_46 {dimension_numbers = #tpu.dot_dimension_numbers<[1], [0], [0], [1], [0, 0, 1, 1], [], []>} : vector<2x32xf32>, vector<32x128xf32>, vector<2x128xf32> -> vector<2x128xf32>
    %109 = arith.addf %107, %108 : vector<2x128xf32>
    %110 = vector.extract_strided_slice %109 {offsets = [0, 0], sizes = [2, 96], strides = [1, 1]} : vector<2x128xf32> to vector<2x96xf32>
    %111 = arith.negf %110 : vector<2x96xf32>
    %112 = math.exp %111 : vector<2x96xf32>
    %cst_47 = arith.constant 1.000000e+00 : f32
    %113 = vector.broadcast %cst_47 : f32 to vector<2x96xf32>
    %114 = arith.addf %113, %112 : vector<2x96xf32>
    %115 = arith.divf %113, %114 : vector<2x96xf32>
    %116 = vector.extract_strided_slice %109 {offsets = [0, 96], sizes = [2, 32], strides = [1, 1]} : vector<2x128xf32> to vector<2x32xf32>
    %117 = math.tanh %116 : vector<2x32xf32>
    %118 = vector.extract_strided_slice %115 {offsets = [0, 0], sizes = [2, 32], strides = [1, 1]} : vector<2x96xf32> to vector<2x32xf32>
    %119 = vector.extract_strided_slice %115 {offsets = [0, 32], sizes = [2, 32], strides = [1, 1]} : vector<2x96xf32> to vector<2x32xf32>
    %120 = vector.extract_strided_slice %115 {offsets = [0, 64], sizes = [2, 32], strides = [1, 1]} : vector<2x96xf32> to vector<2x32xf32>
    %121 = arith.mulf %119, %101 : vector<2x32xf32>
    %122 = arith.mulf %118, %117 : vector<2x32xf32>
    %123 = arith.addf %121, %122 : vector<2x32xf32>
    %124 = math.tanh %123 : vector<2x32xf32>
    %125 = arith.mulf %120, %124 : vector<2x32xf32>
    %126 = vector.extract_strided_slice %29 {offsets = [8, 0], sizes = [2, 128], strides = [1, 1]} : vector<16x128xf32> to vector<2x128xf32>
    %127 = vector.extract_strided_slice %34 {offsets = [4, 0], sizes = [1, 128], strides = [1, 1]} : vector<8x128xf32> to vector<1x128xf32>
    %128 = vector.broadcast %127 : vector<1x128xf32> to vector<2x128xf32>
    %129 = arith.addf %126, %128 : vector<2x128xf32>
    %cst_48 = arith.constant dense<0.000000e+00> : vector<2x128xf32>
    %130 = tpu.matmul %125, %35, %cst_48 {dimension_numbers = #tpu.dot_dimension_numbers<[1], [0], [0], [1], [0, 0, 1, 1], [], []>} : vector<2x32xf32>, vector<32x128xf32>, vector<2x128xf32> -> vector<2x128xf32>
    %131 = arith.addf %129, %130 : vector<2x128xf32>
    %132 = vector.extract_strided_slice %131 {offsets = [0, 0], sizes = [2, 96], strides = [1, 1]} : vector<2x128xf32> to vector<2x96xf32>
    %133 = arith.negf %132 : vector<2x96xf32>
    %134 = math.exp %133 : vector<2x96xf32>
    %cst_49 = arith.constant 1.000000e+00 : f32
    %135 = vector.broadcast %cst_49 : f32 to vector<2x96xf32>
    %136 = arith.addf %135, %134 : vector<2x96xf32>
    %137 = arith.divf %135, %136 : vector<2x96xf32>
    %138 = vector.extract_strided_slice %131 {offsets = [0, 96], sizes = [2, 32], strides = [1, 1]} : vector<2x128xf32> to vector<2x32xf32>
    %139 = math.tanh %138 : vector<2x32xf32>
    %140 = vector.extract_strided_slice %137 {offsets = [0, 0], sizes = [2, 32], strides = [1, 1]} : vector<2x96xf32> to vector<2x32xf32>
    %141 = vector.extract_strided_slice %137 {offsets = [0, 32], sizes = [2, 32], strides = [1, 1]} : vector<2x96xf32> to vector<2x32xf32>
    %142 = vector.extract_strided_slice %137 {offsets = [0, 64], sizes = [2, 32], strides = [1, 1]} : vector<2x96xf32> to vector<2x32xf32>
    %143 = arith.mulf %141, %123 : vector<2x32xf32>
    %144 = arith.mulf %140, %139 : vector<2x32xf32>
    %145 = arith.addf %143, %144 : vector<2x32xf32>
    %146 = math.tanh %145 : vector<2x32xf32>
    %147 = arith.mulf %142, %146 : vector<2x32xf32>
    %148 = vector.extract_strided_slice %29 {offsets = [10, 0], sizes = [2, 128], strides = [1, 1]} : vector<16x128xf32> to vector<2x128xf32>
    %149 = vector.extract_strided_slice %34 {offsets = [5, 0], sizes = [1, 128], strides = [1, 1]} : vector<8x128xf32> to vector<1x128xf32>
    %150 = vector.broadcast %149 : vector<1x128xf32> to vector<2x128xf32>
    %151 = arith.addf %148, %150 : vector<2x128xf32>
    %cst_50 = arith.constant dense<0.000000e+00> : vector<2x128xf32>
    %152 = tpu.matmul %147, %35, %cst_50 {dimension_numbers = #tpu.dot_dimension_numbers<[1], [0], [0], [1], [0, 0, 1, 1], [], []>} : vector<2x32xf32>, vector<32x128xf32>, vector<2x128xf32> -> vector<2x128xf32>
    %153 = arith.addf %151, %152 : vector<2x128xf32>
    %154 = vector.extract_strided_slice %153 {offsets = [0, 0], sizes = [2, 96], strides = [1, 1]} : vector<2x128xf32> to vector<2x96xf32>
    %155 = arith.negf %154 : vector<2x96xf32>
    %156 = math.exp %155 : vector<2x96xf32>
    %cst_51 = arith.constant 1.000000e+00 : f32
    %157 = vector.broadcast %cst_51 : f32 to vector<2x96xf32>
    %158 = arith.addf %157, %156 : vector<2x96xf32>
    %159 = arith.divf %157, %158 : vector<2x96xf32>
    %160 = vector.extract_strided_slice %153 {offsets = [0, 96], sizes = [2, 32], strides = [1, 1]} : vector<2x128xf32> to vector<2x32xf32>
    %161 = math.tanh %160 : vector<2x32xf32>
    %162 = vector.extract_strided_slice %159 {offsets = [0, 0], sizes = [2, 32], strides = [1, 1]} : vector<2x96xf32> to vector<2x32xf32>
    %163 = vector.extract_strided_slice %159 {offsets = [0, 32], sizes = [2, 32], strides = [1, 1]} : vector<2x96xf32> to vector<2x32xf32>
    %164 = vector.extract_strided_slice %159 {offsets = [0, 64], sizes = [2, 32], strides = [1, 1]} : vector<2x96xf32> to vector<2x32xf32>
    %165 = arith.mulf %163, %145 : vector<2x32xf32>
    %166 = arith.mulf %162, %161 : vector<2x32xf32>
    %167 = arith.addf %165, %166 : vector<2x32xf32>
    %168 = math.tanh %167 : vector<2x32xf32>
    %169 = arith.mulf %164, %168 : vector<2x32xf32>
    %170 = vector.extract_strided_slice %29 {offsets = [12, 0], sizes = [2, 128], strides = [1, 1]} : vector<16x128xf32> to vector<2x128xf32>
    %171 = vector.extract_strided_slice %34 {offsets = [6, 0], sizes = [1, 128], strides = [1, 1]} : vector<8x128xf32> to vector<1x128xf32>
    %172 = vector.broadcast %171 : vector<1x128xf32> to vector<2x128xf32>
    %173 = arith.addf %170, %172 : vector<2x128xf32>
    %cst_52 = arith.constant dense<0.000000e+00> : vector<2x128xf32>
    %174 = tpu.matmul %169, %35, %cst_52 {dimension_numbers = #tpu.dot_dimension_numbers<[1], [0], [0], [1], [0, 0, 1, 1], [], []>} : vector<2x32xf32>, vector<32x128xf32>, vector<2x128xf32> -> vector<2x128xf32>
    %175 = arith.addf %173, %174 : vector<2x128xf32>
    %176 = vector.extract_strided_slice %175 {offsets = [0, 0], sizes = [2, 96], strides = [1, 1]} : vector<2x128xf32> to vector<2x96xf32>
    %177 = arith.negf %176 : vector<2x96xf32>
    %178 = math.exp %177 : vector<2x96xf32>
    %cst_53 = arith.constant 1.000000e+00 : f32
    %179 = vector.broadcast %cst_53 : f32 to vector<2x96xf32>
    %180 = arith.addf %179, %178 : vector<2x96xf32>
    %181 = arith.divf %179, %180 : vector<2x96xf32>
    %182 = vector.extract_strided_slice %175 {offsets = [0, 96], sizes = [2, 32], strides = [1, 1]} : vector<2x128xf32> to vector<2x32xf32>
    %183 = math.tanh %182 : vector<2x32xf32>
    %184 = vector.extract_strided_slice %181 {offsets = [0, 0], sizes = [2, 32], strides = [1, 1]} : vector<2x96xf32> to vector<2x32xf32>
    %185 = vector.extract_strided_slice %181 {offsets = [0, 32], sizes = [2, 32], strides = [1, 1]} : vector<2x96xf32> to vector<2x32xf32>
    %186 = vector.extract_strided_slice %181 {offsets = [0, 64], sizes = [2, 32], strides = [1, 1]} : vector<2x96xf32> to vector<2x32xf32>
    %187 = arith.mulf %185, %167 : vector<2x32xf32>
    %188 = arith.mulf %184, %183 : vector<2x32xf32>
    %189 = arith.addf %187, %188 : vector<2x32xf32>
    %190 = math.tanh %189 : vector<2x32xf32>
    %191 = arith.mulf %186, %190 : vector<2x32xf32>
    %192 = vector.extract_strided_slice %29 {offsets = [14, 0], sizes = [2, 128], strides = [1, 1]} : vector<16x128xf32> to vector<2x128xf32>
    %193 = vector.extract_strided_slice %34 {offsets = [7, 0], sizes = [1, 128], strides = [1, 1]} : vector<8x128xf32> to vector<1x128xf32>
    %194 = vector.broadcast %193 : vector<1x128xf32> to vector<2x128xf32>
    %195 = arith.addf %192, %194 : vector<2x128xf32>
    %cst_54 = arith.constant dense<0.000000e+00> : vector<2x128xf32>
    %196 = tpu.matmul %191, %35, %cst_54 {dimension_numbers = #tpu.dot_dimension_numbers<[1], [0], [0], [1], [0, 0, 1, 1], [], []>} : vector<2x32xf32>, vector<32x128xf32>, vector<2x128xf32> -> vector<2x128xf32>
    %197 = arith.addf %195, %196 : vector<2x128xf32>
    %198 = vector.extract_strided_slice %197 {offsets = [0, 0], sizes = [2, 96], strides = [1, 1]} : vector<2x128xf32> to vector<2x96xf32>
    %199 = arith.negf %198 : vector<2x96xf32>
    %200 = math.exp %199 : vector<2x96xf32>
    %cst_55 = arith.constant 1.000000e+00 : f32
    %201 = vector.broadcast %cst_55 : f32 to vector<2x96xf32>
    %202 = arith.addf %201, %200 : vector<2x96xf32>
    %203 = arith.divf %201, %202 : vector<2x96xf32>
    %204 = vector.extract_strided_slice %197 {offsets = [0, 96], sizes = [2, 32], strides = [1, 1]} : vector<2x128xf32> to vector<2x32xf32>
    %205 = math.tanh %204 : vector<2x32xf32>
    %206 = vector.extract_strided_slice %203 {offsets = [0, 0], sizes = [2, 32], strides = [1, 1]} : vector<2x96xf32> to vector<2x32xf32>
    %207 = vector.extract_strided_slice %203 {offsets = [0, 32], sizes = [2, 32], strides = [1, 1]} : vector<2x96xf32> to vector<2x32xf32>
    %208 = vector.extract_strided_slice %203 {offsets = [0, 64], sizes = [2, 32], strides = [1, 1]} : vector<2x96xf32> to vector<2x32xf32>
    %209 = arith.mulf %207, %189 : vector<2x32xf32>
    %210 = arith.mulf %206, %205 : vector<2x32xf32>
    %211 = arith.addf %209, %210 : vector<2x32xf32>
    %212 = math.tanh %211 : vector<2x32xf32>
    %213 = arith.mulf %208, %212 : vector<2x32xf32>
    %214 = tpu.concatenate %59, %81, %103, %125, %147, %169, %191, %213 in 1 : vector<2x32xf32>, vector<2x32xf32>, vector<2x32xf32>, vector<2x32xf32>, vector<2x32xf32>, vector<2x32xf32>, vector<2x32xf32>, vector<2x32xf32> -> vector<2x256xf32>
    %c0_56 = arith.constant 0 : index
    %c0_57 = arith.constant 0 : index
    %215 = vector.load %arg16[%c0_56, %c0_57] : memref<2x256xf32, #tpu.memory_space<vmem>>, vector<2x256xf32>
    tpu.vector_store %arg16[%c0_56, %c0_57], %214 {strides = array<i32>} : memref<2x256xf32, #tpu.memory_space<vmem>>, vector<2x256xf32>,
    %c0_58 = arith.constant 0 : index
    %c0_59 = arith.constant 0 : index
    %216 = vector.load %arg17[%c0_58, %c0_59] : memref<2x32xf32, #tpu.memory_space<vmem>>, vector<2x32xf32>
    tpu.vector_store %arg17[%c0_58, %c0_59], %211 {strides = array<i32>} : memref<2x32xf32, #tpu.memory_space<vmem>>, vector<2x32xf32>,
    return
  }
  func.func @transform_0(%arg0: i32) -> (i32, i32) {
    %c0_i32 = arith.constant 0 : i32
    %c0_i32_0 = arith.constant 0 : i32
    %c0_i32_1 = arith.constant 0 : i32
    return %c0_i32, %c0_i32_0 : i32, i32
  }
  func.func @transform_1(%arg0: i32) -> (i32, i32) {
    %c0_i32 = arith.constant 0 : i32
    %c0_i32_0 = arith.constant 0 : i32
    %c0_i32_1 = arith.constant 0 : i32
    return %c0_i32, %c0_i32_0 : i32, i32
  }
  func.func @transform_2(%arg0: i32) -> (i32, i32) {
    %c0_i32 = arith.constant 0 : i32
    %c0_i32_0 = arith.constant 0 : i32
    %c0_i32_1 = arith.constant 0 : i32
    return %c0_i32, %c0_i32_0 : i32, i32
  }
  func.func @transform_3(%arg0: i32) -> (i32, i32) {
    %c0_i32 = arith.constant 0 : i32
    %c0_i32_0 = arith.constant 0 : i32
    %c0_i32_1 = arith.constant 0 : i32
    return %c0_i32, %c0_i32_0 : i32, i32
  }
  func.func @transform_4(%arg0: i32) -> (i32, i32) {
    %c0_i32 = arith.constant 0 : i32
    %c0_i32_0 = arith.constant 0 : i32
    %c0_i32_1 = arith.constant 0 : i32
    return %c0_i32, %c0_i32_0 : i32, i32
  }
  func.func @transform_5(%arg0: i32) -> (i32, i32) {
    %c0_i32 = arith.constant 0 : i32
    %c0_i32_0 = arith.constant 0 : i32
    %c0_i32_1 = arith.constant 0 : i32
    return %c0_i32, %c0_i32_0 : i32, i32
  }
  func.func @transform_6(%arg0: i32) -> (i32, i32) {
    %c0_i32 = arith.constant 0 : i32
    %c0_i32_0 = arith.constant 0 : i32
    %c0_i32_1 = arith.constant 0 : i32
    return %c0_i32, %c0_i32_0 : i32, i32
  }
  func.func @transform_7(%arg0: i32) -> (i32, i32) {
    %c0_i32 = arith.constant 0 : i32
    %c0_i32_0 = arith.constant 0 : i32
    %c0_i32_1 = arith.constant 0 : i32
    return %c0_i32, %c0_i32_0 : i32, i32
  }
  func.func @transform_8(%arg0: i32) -> (i32, i32) {
    %c0_i32 = arith.constant 0 : i32
    %c0_i32_0 = arith.constant 0 : i32
    %c0_i32_1 = arith.constant 0 : i32
    return %c0_i32, %c0_i32_0 : i32, i32
  }
  func.func @transform_9(%arg0: i32) -> (i32, i32) {
    %c0_i32 = arith.constant 0 : i32
    %c0_i32_0 = arith.constant 0 : i32
    %c0_i32_1 = arith.constant 0 : i32
    return %c0_i32, %c0_i32_0 : i32, i32
  }
  func.func @transform_10(%arg0: i32) -> (i32, i32) {
    %c0_i32 = arith.constant 0 : i32
    %c0_i32_0 = arith.constant 0 : i32
    %c0_i32_1 = arith.constant 0 : i32
    return %c0_i32, %c0_i32_0 : i32, i32
  }
  func.func @transform_11(%arg0: i32) -> (i32, i32) {
    %c0_i32 = arith.constant 0 : i32
    %c0_i32_0 = arith.constant 0 : i32
    %c0_i32_1 = arith.constant 0 : i32
    return %c0_i32, %c0_i32_0 : i32, i32
  }
  func.func @transform_12(%arg0: i32) -> (i32, i32) {
    %c0_i32 = arith.constant 0 : i32
    %c0_i32_0 = arith.constant 0 : i32
    %c0_i32_1 = arith.constant 0 : i32
    return %c0_i32, %c0_i32_0 : i32, i32
  }
  func.func @transform_13(%arg0: i32) -> (i32, i32) {
    %c0_i32 = arith.constant 0 : i32
    %c0_i32_0 = arith.constant 0 : i32
    %c0_i32_1 = arith.constant 0 : i32
    return %c0_i32, %c0_i32_0 : i32, i32
  }
  func.func @transform_14(%arg0: i32) -> (i32, i32) {
    %c0_i32 = arith.constant 0 : i32
    %c0_i32_0 = arith.constant 0 : i32
    %c0_i32_1 = arith.constant 0 : i32
    return %c0_i32, %c0_i32_0 : i32, i32
  }
  func.func @transform_15(%arg0: i32) -> (i32, i32) {
    %c0_i32 = arith.constant 0 : i32
    %c0_i32_0 = arith.constant 0 : i32
    %c0_i32_1 = arith.constant 0 : i32
    return %c0_i32, %c0_i32_0 : i32, i32
  }
  func.func @transform_16(%arg0: i32) -> (i32, i32) {
    %c0_i32 = arith.constant 0 : i32
    %c0_i32_0 = arith.constant 0 : i32
    %c0_i32_1 = arith.constant 0 : i32
    return %c0_i32, %c0_i32_0 : i32, i32
  }
}

</mosaic_0001>

<bundles_post_ra>
// kernel: tpu_custom_call.1
= control target key start
LH: loop header
LB: loop body
LE: loop exit
PB: predicated region body
PF: predicated region fallthrough
CT: control target
= control target key end

     0   :  { %s3197_s0 = inlined_call_operand.vmem [shape: f32[16,16], index: 0, kind: input, shape index: {}]   ;;  %s3198_s1 = inlined_call_operand.vmem [shape: f32[64,64], index: 1, kind: input, shape index: {}]   ;;  %s3199_s2 = inlined_call_operand.vmem [shape: f32[64,8], index: 2, kind: input, shape index: {}]   ;;  %s3200_s3 = inlined_call_operand.hbm [shape: f32[8,16], index: 3, kind: input, shape index: {}]   ;;  %s3201_s4 = inlined_call_operand.vmem [shape: f32[1,16], index: 4, kind: input, shape index: {}]   ;;  %s3202_s5 = inlined_call_operand.vmem [shape: f32[16,128], index: 5, kind: input, shape index: {}]   ;;  %s3203_s6 = inlined_call_operand.vmem [shape: f32[1,128], index: 6, kind: input, shape index: {}]   ;;  %s3204_s7 = inlined_call_operand.vmem [shape: f32[64,128], index: 7, kind: input, shape index: {}]   ;;  %s3205_s8 = inlined_call_operand.hbm [shape: f32[8,64], index: 8, kind: input, shape index: {}]   ;;  %s3206_s9 = inlined_call_operand.vmem [shape: f32[128,12], index: 9, kind: input, shape index: {}]   ;;  %s3207_s10 = inlined_call_operand.vmem [shape: f32[1,12], index: 10, kind: input, shape index: {}]   ;;  %s3208_s11 = inlined_call_operand.vmem [shape: f32[16,128], index: 11, kind: input, shape index: {}]   ;;  %s3209_s12 = inlined_call_operand.vmem [shape: f32[12,128], index: 12, kind: input, shape index: {}]   ;;  %s3210_s13 = inlined_call_operand.vmem [shape: f32[32,128], index: 13, kind: input, shape index: {}]   ;;  %s3211_s14 = inlined_call_operand.vmem [shape: f32[1,128], index: 14, kind: input, shape index: {}]   ;;  %s3212_s15 = inlined_call_operand.hbm [shape: f32[2,256], index: 15, kind: output, shape index: {0}]   ;;  %s3213_s16 = inlined_call_operand.hbm [shape: f32[2,32], index: 16, kind: output, shape index: {1}]  }
   0x1   :  { %3215 = sst [smem:[#allocation14_spill]] %s3197_s0 }
   0x2   :  { %22 = vsyncpa [#allocation3], 0 }
   0x3   :  { %23 = vsyncpa [#allocation6], 0 }
   0x4   :  { %24 = vsyncpa [#allocation4], 0 }
   0x5   :  { %25 = vsyncpa [#allocation9], 0  ;;  %s2652_s21 = smov [#allocation2]   ;;  %s2653_s23 = smov [#allocation5]  }
   0x6   :  { %s38_s22 = sshll.u32 %s2652_s21, 4  ;;  %s56_s24 = sshll.u32 %s2653_s23, 4  ;;  %s39_s22 = int_to_ptr.vmem [resolvable:$true] %s38_s22  ;;  %s57_s24 = int_to_ptr.vmem [resolvable:$true] %s56_s24 }
   0x7   :  { %s2556_s27 = scalar_lea.hbm %s3200_s3, 128 }
   0x8   :  { %p2557_p0 = scmp.ne.s32.totalorder %s3200_s3, %s2556_s27  ;;  %p2560_p1 = scmp.lt.u32.totalorder %s2556_s27, %s3200_s3 }
   0xa   :  { %p2562_p2 = pnand %p2560_p1, %p2557_p0 }
   0xc   :  { %2565 = shalt.err (!%p2562_p2)
}
   0xd   :  { %s2566_s17 = scalar_lea.vmem %s39_s22, 128  ;;  %p2571_p4 = scmp.lt.s32.totalorder %s39_s22, %s39_s22 }
   0xe   :  { %p2567_p3 = scmp.ne.s32.totalorder %s39_s22, %s2566_s17  ;;  %p2572_p5 = scmp.lt.s32.totalorder %s2566_s17, %s2566_s17 }
  0x10   :  { %p2573_p6 = por %p2572_p5, %p2571_p4 }
  0x12   :  { %p2574_p7 = pnand %p2573_p6, %p2567_p3 }
  0x14   :  { %2577 = shalt.err (!%p2574_p7)
}
  0x15   :  { %41 = dma.hbm_to_vmem [thread:$0]  %s3200_s3, 128, %s39_s22, [#allocation3]  }
  0x16   :  { %s2578_s23 = scalar_lea.hbm %s3205_s8, 128 }
  0x17   :  { %p2579_p8 = scmp.ne.s32.totalorder %s3205_s8, %s2578_s23  ;;  %p2582_p9 = scmp.lt.u32.totalorder %s2578_s23, %s3205_s8 }
  0x19   :  { %p2584_p10 = pnand %p2582_p9, %p2579_p8 }
  0x1b   :  { %2587 = shalt.err (!%p2584_p10)
}
  0x1c   :  { %s2588_s29 = scalar_lea.vmem %s57_s24, 128  ;;  %p2593_p12 = scmp.lt.s32.totalorder %s57_s24, %s57_s24 }
  0x1d   :  { %p2589_p11 = scmp.ne.s32.totalorder %s57_s24, %s2588_s29  ;;  %p2594_p13 = scmp.lt.s32.totalorder %s2588_s29, %s2588_s29 }
  0x1f   :  { %p2595_p0 = por %p2594_p13, %p2593_p12 }
  0x21   :  { %p2596_p1 = pnand %p2595_p0, %p2589_p11 }
  0x23   :  { %2599 = shalt.err (!%p2596_p1)
}
  0x24   :  { %59 = dma.hbm_to_vmem [thread:$0]  %s3205_s8, 128, %s57_s24, [#allocation6]  }
  0x25   :  { %2644 = dma.done.wait [#allocation3], 128  }
  0x26   :  { %2645 = vsyncadd [#allocation3], 4294967168 }
  0x27   :  { %2646 = dma.done.wait [#allocation6], 128  }
  0x28   :  { %2647 = vsyncadd [#allocation6], 4294967168  ;;  %vm95_vm0 = vcmask 64512   ;;  %v94_v0 = vld [vmem:[#allocation2] sm:$0xff]  ;;  %v87_v2 = vld [vmem:[%s3199_s2 + $0x8] sm:$0xff]  ;;  %vm232_vm1 = vcmask 523264  }
  0x29   :  { %v86_v1 = vld [vmem:[%s3199_s2] sm:$0xff]  ;;  %2111 = vmatprep.subr.mxu0 %v94_v0  ;;  %v88_v3 = vld [vmem:[%s3199_s2 + $0x10] sm:$0xff]  ;;  %v89_v4 = vld [vmem:[%s3199_s2 + $0x18] sm:$0xff]  ;;  %vm372_vm2 = vcmask 130048   ;;  %vm2655_vm3 = vmmov 0   ;;  %s3216_s23 = sld [smem:[#allocation14_spill]] }
  0x2a   :  { %2113 = vmatprep.mubr.msk.f32.mxu0 %vm95_vm0, %v86_v1  ;;  %2112 = vmatpush3.msra.mxu0 %v94_v0  ;;  %v90_v5 = vld [vmem:[%s3199_s2 + $0x20] sm:$0xff]  ;;  %v91_v6 = vld [vmem:[%s3199_s2 + $0x28] sm:$0xff]  ;;  %v92_v7 = vld [vmem:[%s3199_s2 + $0x30] sm:$0xff]  ;;  %vm896_vm4 = vcmask 1043456   ;;  %vm2657_vm5 = vmmov 1   ;;  %vm892_vm7 = vcmask 97280  }
  0x2b   :  { %2114 = vmatmul.mubr.msk.f32.vlgmr.msra.gmra.mrb[0].mxu0 %vm95_vm0, %v87_v2  ;;  %v93_v8 = vld [vmem:[%s3199_s2 + $0x38] sm:$0xff]  ;;  %v78_v9 = vld [vmem:[%s3198_s1] sm:$0xff]  ;;  %v371_v11 = vld [vmem:[%s3202_s5 + $0x8] sm:$0xff]  ;;  %s2659_s18 = smov 64   ;;  %vm979_vm8 = vcmask 261120   ;;  %s2660_s19 = smov 96  }
  0x2c   :  { %2116 = vmatprep.mubr.msk.f32.mxu0 %vm95_vm0, %v88_v3  ;;  %2141 = vmatprep.mubr.msk.f32.mxu1 %vm232_vm1, %v78_v9  ;;  %v370_v10 = vld [vmem:[%s3202_s5] sm:$0xff]  ;;  %v2817_v25 = vld [vmem:[%s3198_s1 + $0x8] sm:$0xff]  ;;  %v2822_v26 = vld [vmem:[%s3198_s1 + $0x10] sm:$0xff]  ;;  %vm1898_vm9 = vcmask 261126   ;;  %s2661_s2 = smov [#allocation8]  }
  0x2d   :  { %v2369_v12 = vpack.c.bf16 %v371_v11, %v370_v10  ;;  %v2831_v27 = vld [vmem:[%s3198_s1 + $0x18] sm:$0xff]  ;;  %v2836_v28 = vld [vmem:[%s3198_s1 + $0x20] sm:$0xff]  ;;  %v2845_v29 = vld [vmem:[%s3198_s1 + $0x28] sm:$0xff]  ;;  %s1916_s5 = sshll.u32 %s2661_s2, 4  ;;  %s1917_s5 = int_to_ptr.vmem [resolvable:$true] %s1916_s5 }
  0x2e   :  { %v2850_v30 = vld [vmem:[%s3198_s1 + $0x30] sm:$0xff]  ;;  %v2859_v31 = vld [vmem:[%s3198_s1 + $0x38] sm:$0xff]  ;;  %v1938_v32 = vld [vmem:[%s3201_s4] ss:$0 sm:$0xff]  ;;  %s2600_s20 = scalar_lea.vmem %s1917_s5, 32  ;;  %p2605_p3 = scmp.lt.s32.totalorder %s1917_s5, %s1917_s5 }
  0x2f   :  { %2117 = vmatmul.mubr.msk.f32.gmra.mrb[2].mxu0 %vm95_vm0, %v89_v4  ;;  %2370 = vmatprep.subr.bf16.mxu0 %v2369_v12  ;;  %v707_v11 = vld [vmem:[%s3206_s9 + $0x18] sm:$0xff]  ;;  %vm2431_vm6 = vmpackc.low %vm896_vm4, %vm2657_vm5  ;;  %p2601_p2 = scmp.ne.s32.totalorder %s1917_s5, %s2600_s20  ;;  %p2606_p4 = scmp.lt.s32.totalorder %s2600_s20, %s2600_s20 }
  0x30   :  { %2119 = vmatprep.mubr.msk.f32.mxu0 %vm95_vm0, %v90_v5  ;;  %2372 = vmatpush3.bf16.msra.mxu0 %v2369_v12  ;;  %v2654_v5 = vmov 0.0|0.0  }
  0x31   :  { %2389 = vmatprep.subr.bf16.mxu0 %v2654_v5  ;;  %p2607_p5 = por %p2606_p4, %p2605_p3 }
  0x33   :  { %2120 = vmatmul.mubr.msk.f32.gmra.mrb[4].mxu0 %vm95_vm0, %v91_v6  ;;  %v2656_v6 = vmov 0.0   ;;  %p2608_p6 = pnand %p2607_p5, %p2601_p2 }
  0x34   :  { %2122 = vmatprep.mubr.msk.f32.mxu0 %vm95_vm0, %v92_v7  ;;  %v704_v7 = vld [vmem:[%s3206_s9] sm:$0xff] }
  0x37   :  { %2123 = vmatmul.mubr.msk.f32.gmra.mrb[6].mxu0 %vm95_vm0, %v93_v8  ;;  %v705_v8 = vld [vmem:[%s3206_s9 + $0x8] sm:$0xff] }
  0x38   :  { %v2402_v10 = vpack.c.bf16 %v705_v8, %v704_v7  ;;  %v800_v7 = vld [vmem:[%s3208_s11] sm:$0xff]  ;;  %v801_v8 = vld [vmem:[%s3208_s11 + $0x8] sm:$0xff] }
  0xfe   :  { %v2115_v13 = vpop.f32.mrb[0].mxu0 }
  0xff   :  { %v186_v14 = vpop.f32.mrb[1].mxu0 }
 0x100   :  { %v2353_v15 = vpack.c.bf16 %v2115_v13, %v186_v14  ;;  %v708_v13 = vld [vmem:[%s3206_s9 + $0x20] sm:$0xff]  ;;  %v709_v14 = vld [vmem:[%s3206_s9 + $0x28] sm:$0xff] }
 0x102   :  { %v2118_v16 = vpop.f32.mrb[2].mxu0  ;;  %2354 = vmatprep.subr.bf16.mxu1 %v2353_v15 }
 0x103   :  { %v196_v17 = vpop.f32.mrb[3].mxu0  ;;  %2356 = vmatpush3.bf16.msra.mxu1 %v2353_v15  ;;  %v2408_v15 = vpack.c.bf16 %v709_v14, %v708_v13  ;;  %v883_v13 = vld [vmem:[%s3209_s12] sm:$0xff]  ;;  %v884_v14 = vld [vmem:[%s3209_s12 + $0x8] sm:$0xf] }
 0x104   :  { %v2357_v18 = vpack.c.bf16 %v2118_v16, %v196_v17  ;;  %v710_v16 = vld [vmem:[%s3206_s9 + $0x30] sm:$0xff]  ;;  %v711_v17 = vld [vmem:[%s3206_s9 + $0x38] sm:$0xff] }
 0x106   :  { %v2121_v19 = vpop.f32.mrb[4].mxu0  ;;  %2358 = vmatprep.subr.bf16.mxu1 %v2357_v18 }
 0x107   :  { %v206_v20 = vpop.f32.mrb[5].mxu0  ;;  %2360 = vmatpush3.bf16.msra.mxu1 %v2357_v18  ;;  %v2411_v18 = vpack.c.bf16 %v711_v17, %v710_v16  ;;  %v2430_v16 = vpack.c.bf16 %v884_v14, %v883_v13  ;;  %v970_v17 = vld [vmem:[%s3210_s13] sm:$0xff] }
 0x108   :  { %v2361_v21 = vpack.c.bf16 %v2121_v19, %v206_v20  ;;  %v712_v19 = vld [vmem:[%s3206_s9 + $0x40] sm:$0xff]  ;;  %v713_v20 = vld [vmem:[%s3206_s9 + $0x48] sm:$0xff] }
 0x10a   :  { %v2124_v22 = vpop.f32.mrb[6].mxu0  ;;  %2362 = vmatprep.subr.bf16.mxu1 %v2361_v21 }
 0x10b   :  { %v216_v23 = vpop.f32.mrb[7].mxu0  ;;  %2364 = vmatpush3.bf16.msra.mxu1 %v2361_v21  ;;  %v2414_v21 = vpack.c.bf16 %v713_v20, %v712_v19  ;;  %v972_v20 = vld [vmem:[%s3210_s13 + $0x10] sm:$0xff] }
 0x10c   :  { %v2365_v24 = vpack.c.bf16 %v2124_v22, %v216_v23  ;;  %v714_v22 = vld [vmem:[%s3206_s9 + $0x50] sm:$0xff]  ;;  %v715_v23 = vld [vmem:[%s3206_s9 + $0x58] sm:$0xff] }
 0x10e   :  { %2366 = vmatprep.subr.bf16.mxu1 %v2365_v24 }
 0x10f   :  { %2368 = vmatpush3.bf16.msra.mxu1 %v2365_v24  ;;  %v2417_v24 = vpack.c.bf16 %v715_v23, %v714_v22  ;;  %v1965_v23 = vld [vmem:[%s3207_s10] ss:$0 sm:$0xff] }
 0x112   :  { %2142 = vmatmul.mubr.msk.f32.vlgmr.msra.gmra.mrb[0].mxu1 %vm232_vm1, %v2817_v25 }
 0x113   :  { %2144 = vmatprep.mubr.msk.f32.mxu1 %vm232_vm1, %v2822_v26 }
 0x116   :  { %2145 = vmatmul.mubr.msk.f32.gmra.mrb[2].mxu1 %vm232_vm1, %v2831_v27 }
 0x117   :  { %2147 = vmatprep.mubr.msk.f32.mxu1 %vm232_vm1, %v2836_v28 }
 0x11a   :  { %2148 = vmatmul.mubr.msk.f32.gmra.mrb[4].mxu1 %vm232_vm1, %v2845_v29 }
 0x11b   :  { %2150 = vmatprep.mubr.msk.f32.mxu1 %vm232_vm1, %v2850_v30 }
 0x11e   :  { %2151 = vmatmul.mubr.msk.f32.gmra.mrb[6].mxu1 %vm232_vm1, %v2859_v31 }
 0x11f   :  { %2185 = vmatprep.mubr.msk.f32.mxu1 %vm232_vm1, %v78_v9  ;;  %v706_v9 = vld [vmem:[%s3206_s9 + $0x10] sm:$0xff] }
 0x120   :  { %v2405_v12 = vpack.c.bf16 %v707_v11, %v706_v9  ;;  %v2425_v9 = vpack.c.bf16 %v801_v8, %v800_v7 }
 0x1e5   :  { %v2143_v33 = vpop.f32.mrb[0].mxu1 }
 0x1e6   :  { %v329_v34 = vadd.f32 %v2143_v33, %v1938_v32  ;;  %v323_v35 = vpop.f32.mrb[1].mxu1  ;;  %v616_v33 = vld [vmem:[%s3204_s7 + $0x8] sm:$0xff] }
 0x1e7   :  { %v324_v36 = vadd.f32 %v1938_v32, %v323_v35 }
 0x1e8   :  { %v363_v39 = vmax.f32 %v329_v34, 0.0 }
 0x1e9   :  { %v362_v37 = vmax.f32 %v324_v36, 0.0  ;;  %v2146_v38 = vpop.f32.mrb[2].mxu1  ;;  %v615_v36 = vld [vmem:[%s3204_s7] sm:$0xff] }
 0x1ea   :  { %v339_v40 = vadd.f32 %v2146_v38, %v1938_v32  ;;  %v333_v41 = vpop.f32.mrb[3].mxu1 }
 0x1eb   :  { %v334_v42 = vadd.f32 %v1938_v32, %v333_v41  ;;  %2157 = vmatprep.mubr.msk.f32.mxu0 %vm372_vm2, %v362_v37  ;;  %v618_v41 = vld [vmem:[%s3204_s7 + $0x18] sm:$0xff] }
 0x1ec   :  { %2158 = vmatmul.mubr.msk.f32.vlgmr.msra.gmra.mrb[8].mxu0 %vm372_vm2, %v363_v39  ;;  %v365_v45 = vmax.f32 %v339_v40, 0.0 }
 0x1ed   :  { %v364_v43 = vmax.f32 %v334_v42, 0.0  ;;  %v2149_v44 = vpop.f32.mrb[4].mxu1 }
 0x1ee   :  { %v349_v46 = vadd.f32 %v2149_v44, %v1938_v32  ;;  %v343_v47 = vpop.f32.mrb[5].mxu1  ;;  %v617_v44 = vld [vmem:[%s3204_s7 + $0x10] sm:$0xff] }
 0x1ef   :  { %v344_v48 = vadd.f32 %v1938_v32, %v343_v47  ;;  %2160 = vmatprep.mubr.msk.f32.mxu0 %vm372_vm2, %v364_v43 }
 0x1f0   :  { %2161 = vmatmul.mubr.msk.f32.gmra.mrb[10].mxu0 %vm372_vm2, %v365_v45  ;;  %v367_v51 = vmax.f32 %v349_v46, 0.0 }
 0x1f1   :  { %v366_v49 = vmax.f32 %v344_v48, 0.0  ;;  %v2152_v50 = vpop.f32.mrb[6].mxu1 }
 0x1f2   :  { %v359_v52 = vadd.f32 %v2152_v50, %v1938_v32  ;;  %v353_v53 = vpop.f32.mrb[7].mxu1  ;;  %v620_v50 = vld [vmem:[%s3204_s7 + $0x28] sm:$0xff] }
 0x1f3   :  { %v354_v54 = vadd.f32 %v1938_v32, %v353_v53  ;;  %2163 = vmatprep.mubr.msk.f32.mxu0 %vm372_vm2, %v366_v49  ;;  %v619_v53 = vld [vmem:[%s3204_s7 + $0x20] sm:$0xff] }
 0x1f4   :  { %2164 = vmatmul.mubr.msk.f32.gmra.mrb[12].mxu0 %vm372_vm2, %v367_v51  ;;  %v369_v56 = vmax.f32 %v359_v52, 0.0 }
 0x1f5   :  { %v368_v55 = vmax.f32 %v354_v54, 0.0 }
 0x1f7   :  { %2166 = vmatprep.mubr.msk.f32.mxu0 %vm372_vm2, %v368_v55 }
 0x1f8   :  { %2167 = vmatmul.mubr.msk.f32.gmra.mrb[14].mxu0 %vm372_vm2, %v369_v56 }
 0x1f9   :  { %2213 = vmatprep.mubr.msk.f32.mxu0 %vm2655_vm3, %v2656_v6 }
 0x2bf   :  { %v2159_v57 = vpop.f32.mrb[8].mxu0 }
 0x2c0   :  { %v463_v58 = vpop.f32.mrb[9].mxu0 }
 0x2c1   :  { %v2373_v59 = vpack.c.bf16 %v2159_v57, %v463_v58 }
 0x2c3   :  { %v2162_v60 = vpop.f32.mrb[10].mxu0  ;;  %2374 = vmatprep.subr.bf16.mxu1 %v2373_v59 }
 0x2c4   :  { %v473_v61 = vpop.f32.mrb[11].mxu0  ;;  %2376 = vmatpush3.bf16.msra.mxu1 %v2373_v59  ;;  %v622_v59 = vld [vmem:[%s3204_s7 + $0x38] sm:$0xff] }
 0x2c5   :  { %v2377_v62 = vpack.c.bf16 %v2162_v60, %v473_v61 }
 0x2c7   :  { %v2165_v63 = vpop.f32.mrb[12].mxu0  ;;  %2378 = vmatprep.subr.bf16.mxu1 %v2377_v62 }
 0x2c8   :  { %v483_v0 = vpop.f32.mrb[13].mxu0  ;;  %2380 = vmatpush3.bf16.msra.mxu1 %v2377_v62  ;;  %v621_v62 = vld [vmem:[%s3204_s7 + $0x30] sm:$0xff] }
 0x2c9   :  { %v2381_v1 = vpack.c.bf16 %v2165_v63, %v483_v0 }
 0x2cb   :  { %v2168_v2 = vpop.f32.mrb[14].mxu0  ;;  %2382 = vmatprep.subr.bf16.mxu1 %v2381_v1 }
 0x2cc   :  { %v493_v3 = vpop.f32.mrb[15].mxu0  ;;  %2384 = vmatpush3.bf16.msra.mxu1 %v2381_v1 }
 0x2cd   :  { %v2385_v4 = vpack.c.bf16 %v2168_v2, %v493_v3 }
 0x2cf   :  { %2386 = vmatprep.subr.bf16.mxu1 %v2385_v4 }
 0x2d0   :  { %2388 = vmatpush3.bf16.msra.mxu1 %v2385_v4  ;;  %v614_v4 = vld [vmem:[#allocation5] sm:$0xff] }
 0x2d1   :  { %2401 = vmatprep.subr.bf16.mxu1 %v2654_v5 }
 0x2d3   :  { %2186 = vmatmul.mubr.msk.f32.vlgmr.msra.gmra.mrb[8].mxu1 %vm232_vm1, %v2817_v25  ;;  %v716_v25 = vld [vmem:[%s3206_s9 + $0x60] sm:$0xff] }
 0x2d4   :  { %2188 = vmatprep.mubr.msk.f32.mxu1 %vm232_vm1, %v2822_v26  ;;  %2403 = vmatpush3.bf16.msra.mxu1 %v2402_v10  ;;  %v717_v26 = vld [vmem:[%s3206_s9 + $0x68] sm:$0xff] }
 0x2d5   :  { %2404 = vmatprep.subr.bf16.mxu1 %v2654_v5 }
 0x2d7   :  { %2189 = vmatmul.mubr.msk.f32.gmra.mrb[10].mxu1 %vm232_vm1, %v2831_v27  ;;  %v2420_v27 = vpack.c.bf16 %v717_v26, %v716_v25 }
 0x2d8   :  { %2191 = vmatprep.mubr.msk.f32.mxu1 %vm232_vm1, %v2836_v28  ;;  %2406 = vmatpush3.bf16.msra.mxu1 %v2405_v12  ;;  %v718_v28 = vld [vmem:[%s3206_s9 + $0x70] sm:$0xff]  ;;  %v798_v12 = vld [vmem:[%s3216_s23] sm:$0xff] }
 0x2d9   :  { %2407 = vmatprep.subr.bf16.mxu1 %v2654_v5 }
 0x2db   :  { %2192 = vmatmul.mubr.msk.f32.gmra.mrb[12].mxu1 %vm232_vm1, %v2845_v29  ;;  %v719_v29 = vld [vmem:[%s3206_s9 + $0x78] sm:$0xff] }
 0x2dc   :  { %2194 = vmatprep.mubr.msk.f32.mxu1 %vm232_vm1, %v2850_v30  ;;  %2409 = vmatpush3.bf16.msra.mxu1 %v2408_v15  ;;  %v2423_v30 = vpack.c.bf16 %v719_v29, %v718_v28  ;;  %v799_v15 = vld [vmem:[%s3216_s23 + $0x8] sm:$0xff] }
 0x2dd   :  { %2410 = vmatprep.subr.bf16.mxu1 %v2654_v5 }
 0x2df   :  { %2195 = vmatmul.mubr.msk.f32.gmra.mrb[14].mxu1 %vm232_vm1, %v2859_v31  ;;  %v1955_v31 = vld [vmem:[%s3203_s6] ss:$0 sm:$0xff] }
 0x2e0   :  { %2248 = vmatprep.mubr.msk.f32.mxu1 %vm2655_vm3, %v2656_v6  ;;  %2412 = vmatpush3.bf16.msra.mxu1 %v2411_v18  ;;  %v971_v18 = vld [vmem:[%s3210_s13 + $0x8] sm:$0xff] }
 0x2e1   :  { %2413 = vmatprep.subr.bf16.mxu1 %v2654_v5  ;;  %v3014_v19 = vpack.c.bf16 %v971_v18, %v970_v17 }
 0x2e4   :  { %2415 = vmatpush3.bf16.msra.mxu1 %v2414_v21  ;;  %v973_v21 = vld [vmem:[%s3210_s13 + $0x18] sm:$0xff] }
 0x2e5   :  { %2416 = vmatprep.subr.bf16.mxu1 %v2654_v5  ;;  %v3024_v22 = vpack.c.bf16 %v973_v21, %v972_v20 }
 0x2e8   :  { %2418 = vmatpush3.bf16.msra.mxu1 %v2417_v24 }
 0x2e9   :  { %2419 = vmatprep.subr.bf16.mxu1 %v2654_v5 }
 0x2ec   :  { %2421 = vmatpush3.bf16.msra.mxu1 %v2420_v27 }
 0x2ed   :  { %2422 = vmatprep.subr.bf16.mxu1 %v2654_v5 }
 0x2f0   :  { %2424 = vmatpush3.bf16.msra.mxu1 %v2423_v30  ;;  %v974_v30 = vlaneseq }
 0x2f1   :  { %2451 = vmatprep.subr.bf16.mxu1 %v2654_v5 }
 0x3a6   :  { %v2187_v32 = vpop.f32.mrb[8].mxu1 }
 0x3a7   :  { %v581_v34 = vadd.f32 %v2187_v32, %v1955_v31  ;;  %v575_v35 = vpop.f32.mrb[9].mxu1  ;;  %v1968_v32 = vld [vmem:[%s3211_s14] ss:$0 sm:$0xff]  ;;  %s2658_s14 = smov 32  }
 0x3a8   :  { %v576_v37 = vadd.f32 %v1955_v31, %v575_v35 }
 0x3a9   :  { %v624_v38 = vmul.f32 %v616_v33, %v581_v34 }
 0x3aa   :  { %v623_v39 = vmul.f32 %v615_v36, %v576_v37  ;;  %v2190_v40 = vpop.f32.mrb[10].mxu1 }
 0x3ab   :  { %v591_v42 = vadd.f32 %v2190_v40, %v1955_v31  ;;  %v585_v43 = vpop.f32.mrb[11].mxu1 }
 0x3ac   :  { %v2390_v45 = vpack.c.bf16 %v624_v38, %v623_v39  ;;  %v586_v46 = vadd.f32 %v1955_v31, %v585_v43 }
 0x3ad   :  { %v626_v47 = vmul.f32 %v618_v41, %v591_v42 }
 0x3ae   :  { %v625_v48 = vmul.f32 %v617_v44, %v586_v46  ;;  %v2193_v49 = vpop.f32.mrb[12].mxu1  ;;  %2391 = vmatpush3.bf16.msra.mxu0 %v2390_v45 }
 0x3af   :  { %v601_v51 = vadd.f32 %v2193_v49, %v1955_v31  ;;  %v595_v52 = vpop.f32.mrb[13].mxu1  ;;  %2392 = vmatprep.subr.bf16.mxu0 %v2654_v5 }
 0x3b0   :  { %v2393_v54 = vpack.c.bf16 %v626_v47, %v625_v48  ;;  %v596_v55 = vadd.f32 %v1955_v31, %v595_v52 }
 0x3b1   :  { %v628_v56 = vmul.f32 %v620_v50, %v601_v51 }
 0x3b2   :  { %v627_v57 = vmul.f32 %v619_v53, %v596_v55  ;;  %v2196_v58 = vpop.f32.mrb[14].mxu1  ;;  %2394 = vmatpush3.bf16.msra.mxu0 %v2393_v54 }
 0x3b3   :  { %v611_v60 = vadd.f32 %v2196_v58, %v1955_v31  ;;  %v605_v61 = vpop.f32.mrb[15].mxu1  ;;  %2395 = vmatprep.subr.bf16.mxu0 %v2654_v5 }
 0x3b4   :  { %v2396_v63 = vpack.c.bf16 %v628_v56, %v627_v57  ;;  %v606_v0 = vadd.f32 %v1955_v31, %v605_v61  ;;  %v975_v31 = vshrl.u32 %v974_v30, 7 }
 0x3b5   :  { %v630_v1 = vmul.f32 %v622_v59, %v611_v60 }
 0x3b6   :  { %v629_v2 = vmul.f32 %v621_v62, %v606_v0  ;;  %2397 = vmatpush3.bf16.msra.mxu0 %v2396_v63  ;;  %v976_v33 = vsub.s32 0, %v975_v31  ;;  %v1080_v34 = vsub.s32 1, %v975_v31  ;;  %v1191_v35 = vsub.s32 2, %v975_v31 }
 0x3b7   :  { %2398 = vmatprep.subr.bf16.mxu0 %v2654_v5  ;;  %v1303_v36 = vsub.s32 3, %v975_v31  ;;  %v1415_v38 = vsub.s32 4, %v975_v31  ;;  %v1524_v39 = vsub.s32 5, %v975_v31  ;;  %v1635_v40 = vsub.s32 6, %v975_v31 }
 0x3b8   :  { %v2399_v3 = vpack.c.bf16 %v630_v1, %v629_v2  ;;  %v1747_v41 = vsub.s32 7, %v975_v31 }
 0x3ba   :  { %2400 = vmatpush3.bf16.msra.mxu0 %v2399_v3 }
 0x3bb   :  { %2426 = vmatprep.subr.bf16.mxu0 %v2425_v9 }
 0x3bd   :  { %2214 = vmatmul.mubr.msk.f32.vlgmr.msra.gmra.mrb[16].mxu0 %vm232_vm1, %v614_v4 }
 0x3be   :  { %2428 = vmatpush3.bf16.msra.mxu0 %v2425_v9  ;;  %2255 = vmatprep.mubr.msk.f32.mxu0 %vm372_vm2, %v798_v12 }
 0x3bf   :  { %2429 = vmatprep.subr.bf16.mxu0 %v2654_v5 }
 0x3c1   :  { %2256 = vmatmul.mubr.msk.f32.vlgmr.msra.gmra.mrb[18].mxu0 %vm372_vm2, %v799_v15 }
 0x3c2   :  { %2432 = vmatpush3.bf16.msk.msra.mxu0 %vm2431_vm6, %v2430_v16  ;;  %2262 = vmatprep.mubr.msk.f32.mxu0 %vm2655_vm3, %v2656_v6 }
 0x3c3   :  { %2433 = vmatprep.subr.bf16.mxu0 %v2654_v5 }
 0x490   :  { %v700_v10 = vpop.f32.mrb[16].mxu0 }
 0x491   :  { %v2215_v11 = vpop.f32.mrb[17].mxu0  ;;  %2249 = vmatmul.mubr.f32.vlgmr.msra.gmra.mrb[16].mxu1 %v700_v10 }
 0x492   :  { %2306 = vmatprep.mubr.msk.f32.mxu1 %vm2655_vm3, %v2656_v6  ;;  %2453 = vmatpush3.bf16.msra.mxu1 %v3014_v19 }
 0x493   :  { %2454 = vmatprep.subr.bf16.mxu1 %v2654_v5 }
 0x494   :  { %v2257_v28 = vpop.f32.mrb[18].mxu0 }
 0x495   :  { %v874_v29 = vpop.f32.mrb[19].mxu0 }
 0x496   :  { %2456 = vmatpush3.bf16.msra.mxu1 %v3024_v22 }
 0x497   :  { %2463 = vmatprep.subr.bf16.mxu1 %v2654_v5 }
 0x564   :  { %v793_v24 = vpop.f32.mrb[16].mxu1 }
 0x565   :  { %v794_v25 = vadd.f32 %v1965_v23, %v793_v24  ;;  %v2250_v26 = vpop.f32.mrb[17].mxu1 }
 0x567   :  { %v797_v27 = vmax.f32 %v794_v25, 0.0 }
 0x569   :  { %2263 = vmatmul.mubr.msk.f32.vlgmr.msra.gmra.mrb[20].mxu0 %vm892_vm7, %v797_v27 }
 0x56a   :  { %2435 = vmatpush3.bf16.msra.mxu0 %v3014_v19  ;;  %2273 = vmatprep.mubr.msk.f32.mxu0 %vm2655_vm3, %v2656_v6 }
 0x56b   :  { %2436 = vmatprep.subr.bf16.mxu0 %v2654_v5 }
 0x56e   :  { %2438 = vmatpush3.bf16.msra.mxu0 %v3024_v22 }
 0x56f   :  { %2439 = vmatprep.subr.bf16.mxu0 %v2654_v5 }
 0x571   :  { %2274 = vmatmul.mubr.f32.vlgmr.msra.gmra.mrb[22].mxu0 %v2656_v6 }
 0x572   :  { %2441 = vmatpush3.bf16.msra.mxu0 %v3014_v19  ;;  %2284 = vmatprep.mubr.msk.f32.mxu0 %vm2655_vm3, %v2656_v6 }
 0x573   :  { %2442 = vmatprep.subr.bf16.mxu0 %v2654_v5 }
 0x576   :  { %2444 = vmatpush3.bf16.msra.mxu0 %v3024_v22 }
 0x577   :  { %2445 = vmatprep.subr.bf16.mxu0 %v2654_v5 }
 0x63c   :  { %v966_v37 = vpop.f32.mrb[20].mxu0 }
 0x63d   :  { %v967_v42 = vadd.f32 %v1968_v32, %v966_v37  ;;  %v2264_v43 = vpop.f32.mrb[21].mxu0 }
 0x63f   :  { %v977_v44 = vrot.slane %v967_v42, %v976_v33  ;;  %v1081_v45 = vrot.slane %v967_v42, %v1080_v34  ;;  %v1192_v46 = vrot.slane %v967_v42, %v1191_v35  ;;  %v1304_v47 = vrot.slane %v967_v42, %v1303_v36 }
 0x640   :  { %v1416_v48 = vrot.slane %v967_v42, %v1415_v38  ;;  %v1525_v49 = vrot.slane %v967_v42, %v1524_v39  ;;  %v1636_v50 = vrot.slane %v967_v42, %v1635_v40  ;;  %v1748_v51 = vrot.slane %v967_v42, %v1747_v41 }
 0x641   :  { %v978_v52 = vadd.f32 %v977_v44, %v874_v29  ;;  %v1082_v53 = vadd.f32 %v1081_v45, %v874_v29  ;;  %v3047_v54 = vadd.f32 %v1192_v46, %v874_v29  ;;  %v3049_v55 = vadd.f32 %v1304_v47, %v874_v29 }
 0x642   :  { %v3051_v56 = vadd.f32 %v2257_v28, %v1416_v48  ;;  %v3053_v57 = vadd.f32 %v2257_v28, %v1525_v49  ;;  %v3055_v58 = vadd.f32 %v2257_v28, %v1636_v50  ;;  %v3057_v59 = vadd.f32 %v2257_v28, %v1748_v51 }
 0x644   :  { %v1049_v60 = vpop.f32.mrb[22].mxu0 }
 0x645   :  { %v1053_v61 = vadd.f32 %v1049_v60, %v978_v52  ;;  %v2275_v62 = vpop.f32.mrb[23].mxu0 }
 0x647   :  { %2492 = vtanh.f32 %v1053_v61  ;;  %v1971_v0 = vmul.f32 -1.442695, %v1053_v61 }
 0x649   :  { %2494 = vpow2.f32 %v1971_v0 }
 0x651   :  { %v2493_v63 = vpop.eup %2492 }
 0x652   :  { %1063 = vrot.lane.b32.xlu0 %v2493_v63, %s2658_s14 }
 0x653   :  { %v2495_v1 = vpop.eup %2494 }
 0x654   :  { %v1057_v2 = vadd.f32 1.0, %v2495_v1 }
 0x656   :  { %2496 = vrcp.f32 %v1057_v2 }
 0x660   :  { %v2497_v3 = vpop.eup %2496 }
 0x661   :  { %v1061_v8 = vmul.f32 0.0, %v2497_v3 }
 0x6c4   :  { %v1064_v4 = vpop.permute.xlu0 %1063 }
 0x6c5   :  { %v1066_v7 = vmul.f32 %v2497_v3, %v1064_v4 }
 0x6c7   :  { %1068 = vrot.lane.b32.xlu0 %v1066_v7, %s2658_s14 }
 0x739   :  { %v1069_v9 = vpop.permute.xlu0 %1068 }
 0x73a   :  { %v1071_v10 = vadd.f32 %v1069_v9, %v1061_v8 }
 0x73c   :  { %2498 = vtanh.f32 %v1071_v10  ;;  %v1170_v28 = vrot.slane %v1071_v10, 6 }
 0x746   :  { %v2499_v11 = vpop.eup %2498 }
 0x747   :  { %1074 = vrot.lane.b32.xlu1 %v2499_v11, %s2658_s14 }
 0x7b9   :  { %v1075_v12 = vpop.permute.xlu1 %1074 }
 0x7ba   :  { %v1077_v13 = vmul.f32 %v2497_v3, %v1075_v12 }
 0x7bc   :  { %1084 = vrot.lane.b32.xlu1 %v1077_v13, %s2659_s18 }
 0x82e   :  { %v3063_v14 = vpop.permute.xlu1 %1084 }
 0x82f   :  { %2285 = vmatmul.mubr.msk.f32.vlgmr.msra.gmra.mrb[24].mxu0 %vm979_vm8, %v3063_v14 }
 0x830   :  { %2447 = vmatpush3.bf16.msra.mxu0 %v3014_v19  ;;  %2295 = vmatprep.mubr.msk.f32.mxu0 %vm2655_vm3, %v2656_v6 }
 0x831   :  { %2448 = vmatprep.subr.bf16.mxu0 %v2654_v5 }
 0x834   :  { %2450 = vmatpush3.bf16.msra.mxu0 %v3024_v22 }
 0x835   :  { %2457 = vmatprep.subr.bf16.mxu0 %v2654_v5 }
 0x902   :  { %v1154_v15 = vpop.f32.mrb[24].mxu0 }
 0x903   :  { %v1159_v16 = vrot.slane %v1154_v15, 6  ;;  %v2286_v17 = vpop.f32.mrb[25].mxu0 }
 0x905   :  { %v1161_v18 = vadd.f32 %v1159_v16, %v1082_v53 }
 0x907   :  { %2500 = vtanh.f32 %v1161_v18  ;;  %v1973_v21 = vmul.f32 -1.442695, %v1161_v18 }
 0x909   :  { %2502 = vpow2.f32 %v1973_v21 }
 0x911   :  { %v2501_v20 = vpop.eup %2500 }
 0x912   :  { %1174 = vrot.lane.b32.xlu0 %v2501_v20, %s2658_s14 }
 0x913   :  { %v2503_v23 = vpop.eup %2502 }
 0x914   :  { %v1165_v24 = vadd.f32 1.0, %v2503_v23 }
 0x916   :  { %2504 = vrcp.f32 %v1165_v24 }
 0x920   :  { %v2505_v25 = vpop.eup %2504 }
 0x921   :  { %v1172_v29 = vmul.f32 %v2505_v25, %v1170_v28 }
 0x984   :  { %v1175_v26 = vpop.permute.xlu0 %1174 }
 0x985   :  { %v1177_v27 = vmul.f32 %v2505_v25, %v1175_v26 }
 0x987   :  { %1179 = vrot.lane.b32.xlu1 %v1177_v27, %s2658_s14 }
 0x9f9   :  { %v1180_v30 = vpop.permute.xlu1 %1179 }
 0x9fa   :  { %v1182_v31 = vadd.f32 %v1180_v30, %v1172_v29 }
 0x9fc   :  { %2506 = vtanh.f32 %v1182_v31  ;;  %v1282_v48 = vrot.slane %v1182_v31, 6 }
 0xa06   :  { %v2507_v32 = vpop.eup %2506 }
 0xa07   :  { %1185 = vrot.lane.b32.xlu0 %v2507_v32, %s2658_s14 }
 0xa79   :  { %v1186_v33 = vpop.permute.xlu0 %1185 }
 0xa7a   :  { %v3076_v34 = vmul.f32 %v2505_v25, %v1186_v33 }
 0xa7c   :  { %v1195_v35 = vrot.slane %v3076_v34, 2 }
 0xa7e   :  { %1196 = vrot.lane.b32.xlu1 %v1195_v35, %s2659_s18 }
 0xaf0   :  { %v1197_v36 = vpop.permute.xlu1 %1196 }
 0xaf1   :  { %2296 = vmatmul.mubr.msk.f32.vlgmr.msra.gmra.mrb[26].mxu0 %vm979_vm8, %v1197_v36 }
 0xaf2   :  { %2459 = vmatpush3.bf16.msra.mxu0 %v3014_v19  ;;  %2317 = vmatprep.mubr.msk.f32.mxu0 %vm2655_vm3, %v2656_v6 }
 0xaf3   :  { %2460 = vmatprep.subr.bf16.mxu0 %v2654_v5 }
 0xaf6   :  { %2462 = vmatpush3.bf16.msra.mxu0 %v3024_v22 }
 0xaf7   :  { %2469 = vmatprep.subr.bf16.mxu0 %v2654_v5 }
 0xbc4   :  { %v1266_v37 = vpop.f32.mrb[26].mxu0 }
 0xbc5   :  { %v1271_v38 = vrot.slane %v1266_v37, 4  ;;  %v2297_v39 = vpop.f32.mrb[27].mxu0 }
 0xbc7   :  { %v1273_v40 = vadd.f32 %v1271_v38, %v3047_v54 }
 0xbc9   :  { %2508 = vtanh.f32 %v1273_v40  ;;  %v1975_v42 = vmul.f32 -1.442695, %v1273_v40 }
 0xbcb   :  { %2510 = vpow2.f32 %v1975_v42 }
 0xbd3   :  { %v2509_v41 = vpop.eup %2508 }
 0xbd4   :  { %1286 = vrot.lane.b32.xlu0 %v2509_v41, %s2658_s14 }
 0xbd5   :  { %v2511_v43 = vpop.eup %2510 }
 0xbd6   :  { %v1277_v44 = vadd.f32 1.0, %v2511_v43 }
 0xbd8   :  { %2512 = vrcp.f32 %v1277_v44 }
 0xbe2   :  { %v2513_v45 = vpop.eup %2512 }
 0xbe3   :  { %v1284_v49 = vmul.f32 %v2513_v45, %v1282_v48 }
 0xc46   :  { %v1287_v46 = vpop.permute.xlu0 %1286 }
 0xc47   :  { %v1289_v47 = vmul.f32 %v2513_v45, %v1287_v46 }
 0xc49   :  { %1291 = vrot.lane.b32.xlu1 %v1289_v47, %s2658_s14 }
 0xcbb   :  { %v1292_v50 = vpop.permute.xlu1 %1291 }
 0xcbc   :  { %v1294_v51 = vadd.f32 %v1292_v50, %v1284_v49 }
 0xcbe   :  { %2514 = vtanh.f32 %v1294_v51  ;;  %v1394_v11 = vrot.slane %v1294_v51, 6 }
 0xcc8   :  { %v2515_v52 = vpop.eup %2514 }
 0xcc9   :  { %1297 = vrot.lane.b32.xlu0 %v2515_v52, %s2658_s14 }
 0xd3b   :  { %v1298_v53 = vpop.permute.xlu0 %1297 }
 0xd3c   :  { %v3093_v54 = vmul.f32 %v2513_v45, %v1298_v53 }
 0xd3e   :  { %v1307_v60 = vrot.slane %v3093_v54, 4 }
 0xd40   :  { %1308 = vrot.lane.b32.xlu1 %v1307_v60, %s2659_s18 }
 0xdb2   :  { %v1309_v61 = vpop.permute.xlu1 %1308 }
 0xdb3   :  { %2307 = vmatmul.mubr.msk.f32.vlgmr.msra.gmra.mrb[18].mxu1 %vm979_vm8, %v1309_v61 }
 0xdb4   :  { %2465 = vmatpush3.bf16.msra.mxu1 %v3014_v19  ;;  %2328 = vmatprep.mubr.msk.f32.mxu1 %vm2655_vm3, %v2656_v6 }
 0xdb5   :  { %2466 = vmatprep.subr.bf16.mxu1 %v2654_v5 }
 0xdb8   :  { %2468 = vmatpush3.bf16.msra.mxu1 %v3024_v22 }
 0xdb9   :  { %2475 = vmatprep.subr.bf16.mxu1 %v2654_v5 }
 0xe86   :  { %v1378_v62 = vpop.f32.mrb[18].mxu1 }
 0xe87   :  { %v1383_v63 = vrot.slane %v1378_v62, 2  ;;  %v2308_v0 = vpop.f32.mrb[19].mxu1 }
 0xe89   :  { %v1385_v1 = vadd.f32 %v1383_v63, %v3049_v55 }
 0xe8b   :  { %2516 = vtanh.f32 %v1385_v1  ;;  %v1977_v3 = vmul.f32 -1.442695, %v1385_v1 }
 0xe8d   :  { %2518 = vpow2.f32 %v1977_v3 }
 0xe95   :  { %v2517_v2 = vpop.eup %2516 }
 0xe96   :  { %1398 = vrot.lane.b32.xlu0 %v2517_v2, %s2658_s14 }
 0xe97   :  { %v2519_v4 = vpop.eup %2518 }
 0xe98   :  { %v1389_v7 = vadd.f32 1.0, %v2519_v4 }
 0xe9a   :  { %2520 = vrcp.f32 %v1389_v7 }
 0xea4   :  { %v2521_v8 = vpop.eup %2520 }
 0xea5   :  { %v1396_v12 = vmul.f32 %v2521_v8, %v1394_v11 }
 0xf08   :  { %v1399_v9 = vpop.permute.xlu0 %1398 }
 0xf09   :  { %v1401_v10 = vmul.f32 %v2521_v8, %v1399_v9 }
 0xf0b   :  { %1403 = vrot.lane.b32.xlu1 %v1401_v10, %s2658_s14 }
 0xf7d   :  { %v1404_v13 = vpop.permute.xlu1 %1403 }
 0xf7e   :  { %v1406_v15 = vadd.f32 %v1404_v13, %v1396_v12 }
 0xf80   :  { %2522 = vtanh.f32 %v1406_v15  ;;  %v1503_v32 = vrot.slane %v1406_v15, 6 }
 0xf8a   :  { %v2523_v55 = vpop.eup %2522 }
 0xf8b   :  { %1409 = vrot.lane.b32.xlu0 %v2523_v55, %s2658_s14 }
 0xffd   :  { %v1410_v16 = vpop.permute.xlu0 %1409 }
 0xffe   :  { %v3110_v17 = vmul.f32 %v2521_v8, %v1410_v16 }
0x1000   :  { %v1419_v18 = vrot.slane %v3110_v17, 6 }
0x1002   :  { %1420 = vrot.lane.b32.xlu1 %v1419_v18, %s2659_s18 }
0x1074   :  { %v1421_v20 = vpop.permute.xlu1 %1420 }
0x1075   :  { %2318 = vmatmul.mubr.msk.f32.vlgmr.msra.gmra.mrb[28].mxu0 %vm979_vm8, %v1421_v20 }
0x1076   :  { %2471 = vmatpush3.bf16.msra.mxu0 %v3014_v19  ;;  %2339 = vmatprep.mubr.msk.f32.mxu0 %vm2655_vm3, %v2656_v6 }
0x1077   :  { %2472 = vmatprep.subr.bf16.mxu0 %v2654_v5 }
0x107a   :  { %2474 = vmatpush3.bf16.msra.mxu0 %v3024_v22 }
0x1148   :  { %v1490_v21 = vpop.f32.mrb[28].mxu0 }
0x1149   :  { %v1494_v23 = vadd.f32 %v1490_v21, %v3051_v56  ;;  %v2319_v24 = vpop.f32.mrb[29].mxu0 }
0x114b   :  { %2524 = vtanh.f32 %v1494_v23  ;;  %v1979_v26 = vmul.f32 -1.442695, %v1494_v23 }
0x114d   :  { %2526 = vpow2.f32 %v1979_v26 }
0x1155   :  { %v2525_v25 = vpop.eup %2524 }
0x1156   :  { %1507 = vrot.lane.b32.xlu0 %v2525_v25, %s2658_s14 }
0x1157   :  { %v2527_v27 = vpop.eup %2526 }
0x1158   :  { %v1498_v28 = vadd.f32 1.0, %v2527_v27 }
0x115a   :  { %2528 = vrcp.f32 %v1498_v28 }
0x1164   :  { %v2529_v29 = vpop.eup %2528 }
0x1165   :  { %v1505_v33 = vmul.f32 %v2529_v29, %v1503_v32 }
0x11c8   :  { %v1508_v30 = vpop.permute.xlu0 %1507 }
0x11c9   :  { %v1510_v31 = vmul.f32 %v2529_v29, %v1508_v30 }
0x11cb   :  { %1512 = vrot.lane.b32.xlu1 %v1510_v31, %s2658_s14 }
0x123d   :  { %v1513_v36 = vpop.permute.xlu1 %1512 }
0x123e   :  { %v1515_v37 = vadd.f32 %v1513_v36, %v1505_v33 }
0x1240   :  { %2530 = vtanh.f32 %v1515_v37 }
0x124a   :  { %v2531_v56 = vpop.eup %2530 }
0x124b   :  { %1518 = vrot.lane.b32.xlu0 %v2531_v56, %s2658_s14 }
0x12bd   :  { %v1519_v38 = vpop.permute.xlu0 %1518 }
0x12be   :  { %v1521_v39 = vmul.f32 %v2529_v29, %v1519_v38 }
0x12c0   :  { %1528 = vrot.lane.b32.xlu1 %v1521_v39, %s2659_s18 }
0x1332   :  { %v3127_v40 = vpop.permute.xlu1 %1528 }
0x1333   :  { %2329 = vmatmul.mubr.msk.f32.vlgmr.msra.gmra.mrb[20].mxu1 %vm979_vm8, %v3127_v40 }
0x1334   :  { %2477 = vmatpush3.bf16.msra.mxu1 %v3014_v19  ;;  %2350 = vmatprep.mubr.msk.f32.mxu1 %vm2655_vm3, %v2656_v6 }
0x1335   :  { %2478 = vmatprep.subr.bf16.mxu1 %v2654_v5  ;;  %v1614_v5 = vrot.slane %v1515_v37, 6 }
0x1338   :  { %2480 = vmatpush3.bf16.msra.mxu1 %v3024_v22 }
0x1406   :  { %v1598_v41 = vpop.f32.mrb[20].mxu1 }
0x1407   :  { %v1603_v42 = vrot.slane %v1598_v41, 6  ;;  %v2330_v43 = vpop.f32.mrb[21].mxu1 }
0x1409   :  { %v1605_v44 = vadd.f32 %v1603_v42, %v3053_v57 }
0x140b   :  { %2532 = vtanh.f32 %v1605_v44  ;;  %v1981_v46 = vmul.f32 -1.442695, %v1605_v44 }
0x140d   :  { %2534 = vpow2.f32 %v1981_v46 }
0x1415   :  { %v2533_v45 = vpop.eup %2532 }
0x1416   :  { %1618 = vrot.lane.b32.xlu0 %v2533_v45, %s2658_s14 }
0x1417   :  { %v2535_v47 = vpop.eup %2534 }
0x1418   :  { %v1609_v19 = vadd.f32 1.0, %v2535_v47 }
0x141a   :  { %2536 = vrcp.f32 %v1609_v19 }
0x1424   :  { %v2537_v48 = vpop.eup %2536 }
0x1425   :  { %v1616_v22 = vmul.f32 %v2537_v48, %v1614_v5 }
0x1488   :  { %v1619_v6 = vpop.permute.xlu0 %1618 }
0x1489   :  { %v1621_v49 = vmul.f32 %v2537_v48, %v1619_v6 }
0x148b   :  { %1623 = vrot.lane.b32.xlu1 %v1621_v49, %s2658_s14 }
0x14fd   :  { %v1624_v50 = vpop.permute.xlu1 %1623 }
0x14fe   :  { %v1626_v51 = vadd.f32 %v1624_v50, %v1616_v22 }
0x1500   :  { %2538 = vtanh.f32 %v1626_v51  ;;  %v1726_v12 = vrot.slane %v1626_v51, 6 }
0x150a   :  { %v2539_v57 = vpop.eup %2538 }
0x150b   :  { %1629 = vrot.lane.b32.xlu0 %v2539_v57, %s2658_s14 }
0x157d   :  { %v1630_v52 = vpop.permute.xlu0 %1629 }
0x157e   :  { %v1632_v53 = vmul.f32 %v2537_v48, %v1630_v52 }
0x1580   :  { %v1639_v61 = vrot.slane %v1632_v53, 2 }
0x1582   :  { %1640 = vrot.lane.b32.xlu1 %v1639_v61, %s2659_s18 }
0x15f4   :  { %v1641_v62 = vpop.permute.xlu1 %1640 }
0x15f5   :  { %2340 = vmatmul.mubr.msk.f32.vlgmr.msra.gmra.mrb[30].mxu0 %vm979_vm8, %v1641_v62 }
0x16c8   :  { %v1710_v63 = vpop.f32.mrb[30].mxu0 }
0x16c9   :  { %v1715_v0 = vrot.slane %v1710_v63, 4  ;;  %v2341_v1 = vpop.f32.mrb[31].mxu0 }
0x16cb   :  { %v1717_v2 = vadd.f32 %v1715_v0, %v3055_v58 }
0x16cd   :  { %2540 = vtanh.f32 %v1717_v2  ;;  %v1983_v4 = vmul.f32 -1.442695, %v1717_v2 }
0x16cf   :  { %2542 = vpow2.f32 %v1983_v4 }
0x16d7   :  { %v2541_v3 = vpop.eup %2540 }
0x16d8   :  { %1730 = vrot.lane.b32.xlu0 %v2541_v3, %s2658_s14 }
0x16d9   :  { %v2543_v7 = vpop.eup %2542 }
0x16da   :  { %v1721_v8 = vadd.f32 1.0, %v2543_v7 }
0x16dc   :  { %2544 = vrcp.f32 %v1721_v8 }
0x16e6   :  { %v2545_v9 = vpop.eup %2544 }
0x16e7   :  { %v1728_v13 = vmul.f32 %v2545_v9, %v1726_v12 }
0x174a   :  { %v1731_v10 = vpop.permute.xlu0 %1730 }
0x174b   :  { %v1733_v11 = vmul.f32 %v2545_v9, %v1731_v10 }
0x174d   :  { %1735 = vrot.lane.b32.xlu1 %v1733_v11, %s2658_s14 }
0x17bf   :  { %v1736_v15 = vpop.permute.xlu1 %1735 }
0x17c0   :  { %v1738_v55 = vadd.f32 %v1736_v15, %v1728_v13 }
0x17c2   :  { %2546 = vtanh.f32 %v1738_v55 }
0x17cc   :  { %v2547_v58 = vpop.eup %2546 }
0x17cd   :  { %1741 = vrot.lane.b32.xlu0 %v2547_v58, %s2658_s14 }
0x183f   :  { %v1742_v16 = vpop.permute.xlu0 %1741 }
0x1840   :  { %v3146_v20 = vmul.f32 %v2545_v9, %v1742_v16 }
0x1842   :  { %v1751_v21 = vrot.slane %v3146_v20, 4 }
0x1844   :  { %1752 = vrot.lane.b32.xlu1 %v1751_v21, %s2659_s18 }
0x18b6   :  { %v1753_v23 = vpop.permute.xlu1 %1752 }
0x18b7   :  { %2351 = vmatmul.mubr.msk.f32.vlgmr.msra.gmra.mrb[22].mxu1 %vm979_vm8, %v1753_v23 }
0x198a   :  { %v1822_v24 = vpop.f32.mrb[22].mxu1 }
0x198b   :  { %v1827_v25 = vrot.slane %v1822_v24, 2  ;;  %v2352_v26 = vpop.f32.mrb[23].mxu1 }
0x198d   :  { %v1829_v27 = vadd.f32 %v1827_v25, %v3057_v59  ;;  %v1838_v59 = vrot.slane %v1738_v55, 6 }
0x198f   :  { %2548 = vtanh.f32 %v1829_v27  ;;  %v1985_v29 = vmul.f32 -1.442695, %v1829_v27 }
0x1991   :  { %2550 = vpow2.f32 %v1985_v29 }
0x1999   :  { %v2549_v28 = vpop.eup %2548 }
0x199a   :  { %1842 = vrot.lane.b32.xlu0 %v2549_v28, %s2658_s14 }
0x199b   :  { %v2551_v30 = vpop.eup %2550 }
0x199c   :  { %v1833_v31 = vadd.f32 1.0, %v2551_v30 }
0x199e   :  { %2552 = vrcp.f32 %v1833_v31 }
0x19a8   :  { %v2553_v32 = vpop.eup %2552 }
0x19a9   :  { %v1840_v37 = vmul.f32 %v2553_v32, %v1838_v59 }
0x1a0c   :  { %v1843_v33 = vpop.permute.xlu0 %1842 }
0x1a0d   :  { %v1845_v36 = vmul.f32 %v2553_v32, %v1843_v33 }
0x1a0f   :  { %1847 = vrot.lane.b32.xlu1 %v1845_v36, %s2658_s14 }
0x1a13   :  { %1858 = vrot.lane.b32.xlu1 %v1195_v35, %s2660_s19 }
0x1a17   :  { %1862 = vrot.lane.b32.xlu1 %v1419_v18, %s2658_s14 }
0x1a81   :  { %v1848_v56 = vpop.permute.xlu1 %1847 }
0x1a82   :  { %v1850_v38 = vadd.f32 %v1848_v56, %v1840_v37 }
0x1a84   :  { %2554 = vtanh.f32 %v1850_v38  ;;  %1895 = vrot.lane.b32.xlu1 %v1850_v38, %s2660_s19 }
0x1a85   :  { %v1859_v41 = vpop.permute.xlu1 %1858 }
0x1a89   :  { %v1863_v42 = vpop.permute.xlu1 %1862 }
0x1a8e   :  { %v2555_v39 = vpop.eup %2554 }
0x1a8f   :  { %1853 = vrot.lane.b32.xlu0 %v2555_v39, %s2658_s14 }
0x1a93   :  { %1866 = vrot.lane.b32.xlu0 %v1639_v61, %s2660_s19 }
0x1af6   :  { %v1896_v43 = vpop.permute.xlu1 %1895 }
0x1af7   :  { %1899 = vst.msk [vmem:[#allocation8 - $0x6] sm:$0xc0] %vm1898_vm9, %v1896_v43 }
0x1af8   :  { %2611 = shalt.err (!%p2608_p6)
}
0x1af9   :  { %s2612_s24 = scalar_lea.hbm %s3213_s16, 32 }
0x1afa   :  { %p2613_p7 = scmp.ne.s32.totalorder %s3213_s16, %s2612_s24  ;;  %p2616_p8 = scmp.lt.u32.totalorder %s2612_s24, %s3213_s16 }
0x1afc   :  { %p2618_p9 = pnand %p2616_p8, %p2613_p7 }
0x1afe   :  { %2621 = shalt.err (!%p2618_p9)
}
0x1aff   :  { %1919 = dma.vmem_to_hbm [thread:$0]  %s1917_s5, 32, %s3213_s16, [#allocation9]   ;;  %v1875_v44 = vsel %vm979_vm8, %v3063_v14, %v1859_v41  ;;  %vm1877_vm10 = vcmask 785408  }
0x1b00   :  { %s2662_s28 = smov [#allocation7]   ;;  %v1876_v46 = vsel %vm232_vm1, %v1875_v44, %v1307_v60 }
0x1b01   :  { %v1854_v34 = vpop.permute.xlu0 %1853  ;;  %s1906_s9 = sshll.u32 %s2662_s28, 4  ;;  %v1878_v48 = vsel %vm1877_vm10, %v1876_v46, %v1863_v42  ;;  %s1907_s9 = int_to_ptr.vmem [resolvable:$true] %s1906_s9 }
0x1b02   :  { %v1856_v35 = vmul.f32 %v2553_v32, %v1854_v34  ;;  %s2622_s16 = scalar_lea.vmem %s1907_s9, 64  ;;  %p2627_p11 = scmp.lt.s32.totalorder %s1907_s9, %s1907_s9 }
0x1b03   :  { %p2623_p10 = scmp.ne.s32.totalorder %s1907_s9, %s2622_s16  ;;  %p2628_p12 = scmp.lt.s32.totalorder %s2622_s16, %s2622_s16 }
0x1b04   :  { %v1871_v17 = vrot.slane %v1856_v35, 6 }
0x1b05   :  { %v1867_v18 = vpop.permute.xlu0 %1866  ;;  %p2629_p13 = por %p2628_p12, %p2627_p11 }
0x1b06   :  { %1872 = vrot.lane.b32.xlu0 %v1871_v17, %s2658_s14  ;;  %v1879_v45 = vsel %vm979_vm8, %v3127_v40, %v1867_v18 }
0x1b07   :  { %v1880_v47 = vsel %vm232_vm1, %v1879_v45, %v1751_v21  ;;  %p2630_p0 = pnand %p2629_p13, %p2623_p10 }
0x1b78   :  { %v1873_v19 = vpop.permute.xlu0 %1872 }
0x1b79   :  { %v1881_v6 = vsel %vm1877_vm10, %v1880_v47, %v1873_v19 }
0x1b7a   :  { %v1884_v49 = vcombine.low %v1878_v48, %v1881_v6 }
0x1b7c   :  { %1986 = vst.sshfl [vmem:[#allocation7] sm:$0x33 pattern:$0x76325410] %v1884_v49 }
0x1b7d   :  { %2633 = shalt.err (!%p2630_p0)
}
0x1b7e   :  { %s2634_s3 = scalar_lea.hbm %s3212_s15, 64 }
0x1b7f   :  { %p2635_p1 = scmp.ne.s32.totalorder %s3212_s15, %s2634_s3  ;;  %p2638_p2 = scmp.lt.u32.totalorder %s2634_s3, %s3212_s15 }
0x1b81   :  { %p2640_p3 = pnand %p2638_p2, %p2635_p1 }
0x1b83   :  { %2643 = shalt.err (!%p2640_p3)
}
0x1b84   :  { %1909 = dma.vmem_to_hbm [thread:$0]  %s1907_s9, 64, %s3212_s15, [#allocation4]  }
0x1b85   :  { %2648 = dma.done.wait [#allocation4], 64  }
0x1b86   :  { %2649 = vsyncadd [#allocation4], 4294967232 }
0x1b87   :  { %2650 = dma.done.wait [#allocation9], 32  }
0x1b88   :  { %2651 = vsyncadd [#allocation9], 4294967264 }
0x1b89   :  { %1926 = vsyncpa [#allocation3], 1 }
0x1b8a   :  { %1927 = vsyncpa [#allocation6], 1 }
0x1b8b   :  { %1928 = vsyncpa [#allocation4], 1 }
0x1b8c   :  { %1929 = vsyncpa [#allocation9], 1 }

</bundles_post_ra>
